<compile_context>
chip_gen: v5e
topology: v5e:2x2
jax: 0.10.0
libtpu: 0.0.40
codegen_flags: <defaults>
</compile_context>

<pallas_src>
import numpy as np
import jax
import jax.numpy as jnp
from jax.experimental import pallas as pl
from jax.experimental.pallas import tpu as pltpu

# ---------------- configuration (small test shapes) ----------------
IMG_SIZE = 8          # img_size
IN_CH = 2             # in_channel
NUM_CLASSES = 4
DIM_EXPAND = 2        # dim_expand_ratio
NUM_MASKS = 2
C_LIGHT = 3.0e8
WLEN = 532e-9         # wlength_vc
RIDX_AIR = 1.0
RIDX_MASK = 1.5
ATTENU = 100.0        # attenu_factor
TOTAL = 32            # total_x_num == total_y_num
MASK_N = 16           # mask_x_num == mask_y_num
OBJ_N = 16            # obj_x_num == obj_y_num
DX = DY = 8e-6
MASK_BASE_THICK = 1.0e-6
OBJ_MASK_DIST = 2e-3
MASK_MASK_DIST = 2e-3
MASK_SENSOR_DIST = 3e-3

LANE = 128            # TPU lane width


# ============================ Pallas kernel ============================

def _bf16(x):
    return x.astype(jnp.bfloat16)


def _cmm(ar, ai, br, bi):
    """Complex matmul, plain 4-multiply form. bf16 MXU operands, f32 accumulation."""
    ar = _bf16(ar); ai = _bf16(ai); br = _bf16(br); bi = _bf16(bi)
    rr = jnp.dot(ar, br, preferred_element_type=jnp.float32)
    ii = jnp.dot(ai, bi, preferred_element_type=jnp.float32)
    ri = jnp.dot(ar, bi, preferred_element_type=jnp.float32)
    ir = jnp.dot(ai, br, preferred_element_type=jnp.float32)
    return rr - ii, ri + ir


def _fused_kernel(x_ref, emb_ref, m1_ref, m2_ref,
                  fer_ref, fei_ref, efrr_ref, efri_ref,
                  fr_ref, fi_ref, fbr_ref, fbi_ref,
                  gr_ref, gi_ref, gbr_ref, gbi_ref,
                  hr_ref, hi_ref, tr_ref, ti_ref,
                  pc_ref, pcbt_ref, o_ref):
    # ---- digital encoder ----
    # TODO(synk): Digital_Encoder_ClsEmd body not provided; synthetic channel-mix +
    # class-embedding + gelu + channel-mix + tanh surrogate, expressed as
    # block-diagonal matmuls in the stacked (y, b*C*S + c*S + x) layout.
    h = jnp.dot(_bf16(x_ref[...]), m1_ref[...],
                preferred_element_type=jnp.float32) + emb_ref[...]
    h = jax.nn.gelu(h, approximate=True)                               # f32 elementwise
    xe = jnp.tanh(jnp.dot(_bf16(h), m2_ref[...],
                          preferred_element_type=jnp.float32))

    # ---- img_preprocess: phase encode (f32 elementwise) ----
    ph = jnp.clip(xe * np.pi + np.pi, 0.0, 2.0 * np.pi)
    u8r = jnp.cos(ph)                                                  # (S, B*C*S)
    u8i = jnp.sin(ph)

    # ---- first free-space propagation ----
    # TODO(synk): FreeSpaceProp body not provided; angular-spectrum method with the
    # nearest-upsample + zero-pad folded into the DFT factors (F@E, block-diag(E^T@F)).
    ar, ai = _cmm(fer_ref[...], fei_ref[...], u8r, u8i)                # (N, B*C*S)
    sr, si = _cmm(ar, ai, efrr_ref[...], efri_ref[...])                # (N, B*C*N)
    hr = hr_ref[0]
    hi = hi_ref[0]
    vr = sr * hr - si * hi                                             # f32 elementwise
    vi = sr * hi + si * hr
    br, bi = _cmm(gr_ref[...], gi_ref[...], vr, vi)
    ur, ui = _cmm(br, bi, gbr_ref[...], gbi_ref[...])                  # (N, B*C*N)

    # ---- [mask -> prop] x NUM_MASKS (statically unrolled) ----
    for m in range(NUM_MASKS):
        # TODO(synk): MaskBlockPhase body not provided; per-channel complex
        # transmission (phase + attenuation) multiply, pre-tiled to the stacked layout.
        tr = tr_ref[m]
        ti = ti_ref[m]
        wr = ur * tr - ui * ti
        wi = ur * ti + ui * tr
        ar, ai = _cmm(fr_ref[...], fi_ref[...], wr, wi)                # DFT along y
        sr, si = _cmm(ar, ai, fbr_ref[...], fbi_ref[...])              # DFT along x (block-diag)
        hr = hr_ref[m + 1]
        hi = hi_ref[m + 1]
        vr = sr * hr - si * hi
        vi = sr * hi + si * hr
        br, bi = _cmm(gr_ref[...], gi_ref[...], vr, vi)                # IDFT along y
        ur, ui = _cmm(br, bi, gbr_ref[...], gbi_ref[...])              # IDFT along x

    # ---- |field|, center-crop + avg-pool (folded into Pc / zero-padded Pc^T), square ----
    mag = jnp.sqrt(ur * ur + ui * ui)                                  # (N, B*C*N), f32
    py = jnp.dot(pc_ref[...], _bf16(mag),
                 preferred_element_type=jnp.float32)                   # (S, B*C*N)
    pooled = jnp.dot(_bf16(py), pcbt_ref[...],
                     preferred_element_type=jnp.float32)               # (S, OUT_W) lane-dense
    o_ref[...] = pooled * pooled


# ============================ pallas_call wrapper ============================

def _fused_call(x_in, emb_big, M1, M2, consts, S, out_w):
    def fs(shape):
        nd = len(shape)
        return pl.BlockSpec(tuple(shape), lambda i, _nd=nd: (0,) * _nd)

    args = (x_in, emb_big, M1, M2,
            consts["fe_r"], consts["fe_i"], consts["efr_r"], consts["efr_i"],
            consts["f_r"], consts["f_i"], consts["fb_r"], consts["fb_i"],
            consts["g_r"], consts["g_i"], consts["gb_r"], consts["gb_i"],
            consts["h_r"], consts["h_i"], consts["t_r"], consts["t_i"],
            consts["pc"], consts["pcbt"])

    return pl.pallas_call(
        _fused_kernel,
        out_shape=jax.ShapeDtypeStruct((S, out_w), jnp.float32),
        # Single-step grid: at this size one TC does all the work.  For larger batch,
        # add a "parallel" axis over 128-lane (b,c) column blocks to shard v7x's 2 TCs.
        grid=(1,),
        in_specs=[fs(a.shape) for a in args],
        out_specs=fs((S, out_w)),
        compiler_params=pltpu.CompilerParams(dimension_semantics=("arbitrary",)),
    )(*args)


# ============================ host-side constant builders ============================

def make_dft_mats(N):
    idx = np.arange(N)
    ang = -2.0 * np.pi * np.outer(idx, idx) / N
    Fr = np.cos(ang).astype(np.float32)
    Fi = np.sin(ang).astype(np.float32)
    Gr = (np.cos(ang) / N).astype(np.float32)      # inverse DFT = conj(F)/N
    Gi = (-np.sin(ang) / N).astype(np.float32)
    return Fr, Fi, Gr, Gi


def make_transfer_fn(N, dx, dy, wlen, ridx, z):
    # TODO(synk): FreeSpaceProp transfer function not provided; angular-spectrum H.
    fx = np.fft.fftfreq(N, d=dx)
    fy = np.fft.fftfreq(N, d=dy)
    FY, FX = np.meshgrid(fy, fx, indexing="ij")
    k = 2.0 * np.pi * ridx / wlen
    arg = k * k - (2.0 * np.pi * FX) ** 2 - (2.0 * np.pi * FY) ** 2
    prop = arg > 0.0
    kz = np.sqrt(np.maximum(arg, 0.0))
    Hr = np.where(prop, np.cos(kz * z), 0.0).astype(np.float32)
    Hi = np.where(prop, np.sin(kz * z), 0.0).astype(np.float32)
    return Hr, Hi


def make_mask_transmission(thickness, total, ridx_mask, ridx_air, freq, c,
                           attenu, base_thick):
    # TODO(synk): MaskBlockPhase body not provided; phase + attenuation model.
    t = thickness + base_thick                       # [C, M, M]
    phase = 2.0 * np.pi * freq * (ridx_mask - ridx_air) * t / c
    amp = jnp.exp(-attenu * t)
    tr = amp * jnp.cos(phase)
    ti = amp * jnp.sin(phase)
    pad = (total - thickness.shape[-1]) // 2
    tr = jnp.pad(tr, ((0, 0), (pad, pad), (pad, pad)), constant_values=1.0)
    ti = jnp.pad(ti, ((0, 0), (pad, pad), (pad, pad)), constant_values=0.0)
    return tr.astype(jnp.float32), ti.astype(jnp.float32)


def make_expand_matrix(total, obj_n, img_size):
    """E (total, img_size): nearest-upsample img_size->obj_n then center zero-pad to total."""
    up = obj_n // img_size
    pad = total // 2 - obj_n // 2
    E = np.zeros((total, img_size), np.float32)
    for i in range(obj_n):
        E[pad + i, i // up] = 1.0
    return E


def make_crop_pool_matrix(total, obj_n, img_size):
    """Pc (img_size, total): center-crop total->obj_n then non-overlapping avg-pool."""
    k = obj_n // img_size
    y0 = total // 2 - obj_n // 2
    Pc = np.zeros((img_size, total), np.float32)
    for s in range(img_size):
        Pc[s, y0 + s * k: y0 + (s + 1) * k] = 1.0 / k
    return Pc


# ============================ forward pass ============================

def snapshot_forward(x, labels, params):
    B, C, S, _ = x.shape
    Cr = params["w1"].shape[0]
    consts = params["consts"]

    # encoder weights expanded to block-diagonal matrices acting on the stacked layout
    # (bf16: MXU operands only).
    eyeB = jnp.eye(B, dtype=jnp.float32)
    eyeS = jnp.eye(S, dtype=jnp.float32)
    M1 = jnp.kron(eyeB, jnp.kron(params["w1"].T, eyeS)).astype(jnp.bfloat16)  # (B*C*S, B*Cr*S)
    M2 = jnp.kron(eyeB, jnp.kron(params["w2"].T, eyeS)).astype(jnp.bfloat16)  # (B*Cr*S, B*C*S)

    emb_sel = params["emb"][labels]                       # (B, Cr)
    emb_big = jnp.broadcast_to(emb_sel[:, :, None], (B, Cr, S)).reshape(1, B * Cr * S)
    emb_big = jnp.broadcast_to(emb_big, (S, B * Cr * S))  # f32 (added post-matmul)

    # input in the stacked (row = y, col = b*C*S + c*S + x) layout
    x_in = jnp.transpose(x, (2, 0, 1, 3)).reshape(S, B * C * S)

    out_w = consts["pcbt"].shape[1]                       # lane-dense (>= 128) output width
    out2d = _fused_call(x_in, emb_big, M1, M2, consts, S, out_w)
    out2d = out2d[:, :B * C * S]                          # drop zero-padded lanes

    out = out2d.reshape(S, B, C, S).transpose(1, 2, 0, 3)  # -> (B, C, S, S)
    scale = jax.nn.softplus(params["scale"])
    return out, scale


# ============================ main ============================

if __name__ == "__main__":
    key = jax.random.PRNGKey(0)
    k_x, k_w1, k_w2, k_emb, k_th = jax.random.split(key, 5)

    B = 2
    x = jax.random.normal(k_x, (B, IN_CH, IMG_SIZE, IMG_SIZE), jnp.float32)
    labels = jnp.array([1, 3], dtype=jnp.int32)

    Cr = IN_CH * DIM_EXPAND
    w1 = jax.random.normal(k_w1, (Cr, IN_CH), jnp.float32) * 0.3
    w2 = jax.random.normal(k_w2, (IN_CH, Cr), jnp.float32) * 0.3
    emb = jax.random.normal(k_emb, (NUM_CLASSES, Cr), jnp.float32) * 0.1
    scale_param = jnp.float32(1.0)

    freq = C_LIGHT / WLEN
    thickness = jax.random.uniform(
        k_th, (NUM_MASKS, IN_CH, MASK_N, MASK_N), jnp.float32, 0.0, 2e-6)

    BC = B * IN_CH
    N = TOTAL

    # --- DFT factors, with first-prop upsample/pad and final crop/pool folded in ---
    # NOTE: kron-expanded block-diagonal constants scale as (BC)^2; acceptable at this
    # test size, switch to a per-(b,c) grid axis before scaling batch (v7x VMEM).
    Fr, Fi, Gr, Gi = make_dft_mats(N)
    E = make_expand_matrix(N, OBJ_N, IMG_SIZE)              # (N, S)
    Pc = make_crop_pool_matrix(N, OBJ_N, IMG_SIZE)          # (S, N)
    eyeBC = np.eye(BC, dtype=np.float32)

    # lane-dense output: zero-pad the folded block-diag Pc^T to a multiple of 128 lanes
    out_w = max(LANE, ((BC * IMG_SIZE + LANE - 1) // LANE) * LANE)
    pcbt_full = np.kron(eyeBC, np.ascontiguousarray(Pc.T))  # (BC*N, BC*S)
    pcbt_pad = np.zeros((BC * N, out_w), np.float32)
    pcbt_pad[:, :BC * IMG_SIZE] = pcbt_full

    consts = dict(
        # MXU-operand constants -> bf16
        fe_r=jnp.asarray(Fr @ E, jnp.bfloat16),                           # (N, S)
        fe_i=jnp.asarray(Fi @ E, jnp.bfloat16),
        efr_r=jnp.asarray(np.kron(eyeBC, E.T @ Fr), jnp.bfloat16),        # (BC*S, BC*N)
        efr_i=jnp.asarray(np.kron(eyeBC, E.T @ Fi), jnp.bfloat16),
        f_r=jnp.asarray(Fr, jnp.bfloat16), f_i=jnp.asarray(Fi, jnp.bfloat16),   # (N, N)
        fb_r=jnp.asarray(np.kron(eyeBC, Fr), jnp.bfloat16),               # (BC*N, BC*N)
        fb_i=jnp.asarray(np.kron(eyeBC, Fi), jnp.bfloat16),
        g_r=jnp.asarray(Gr, jnp.bfloat16), g_i=jnp.asarray(Gi, jnp.bfloat16),
        gb_r=jnp.asarray(np.kron(eyeBC, Gr), jnp.bfloat16),
        gb_i=jnp.asarray(np.kron(eyeBC, Gi), jnp.bfloat16),
        pc=jnp.asarray(Pc, jnp.bfloat16),                                 # (S, N)
        pcbt=jnp.asarray(pcbt_pad, jnp.bfloat16),                         # (BC*N, out_w)
    )

    # --- angular-spectrum transfer functions (f32: elementwise VPU path) ---
    dists = [OBJ_MASK_DIST] + [MASK_MASK_DIST] * (NUM_MASKS - 1) + [MASK_SENSOR_DIST]
    Hr_list, Hi_list = [], []
    for z in dists:
        Hr_, Hi_ = make_transfer_fn(N, DX, DY, WLEN, RIDX_AIR, z)
        Hr_list.append(np.tile(Hr_, (1, BC)))
        Hi_list.append(np.tile(Hi_, (1, BC)))
    consts["h_r"] = jnp.asarray(np.stack(Hr_list))          # (NUM_MASKS+1, N, BC*N)
    consts["h_i"] = jnp.asarray(np.stack(Hi_list))

    # --- per-mask complex transmission (f32: elementwise VPU path) ---
    tr_list, ti_list = [], []
    for m in range(NUM_MASKS):
        tr, ti = make_mask_transmission(thickness[m], N, RIDX_MASK, RIDX_AIR,
                                        freq, C_LIGHT, ATTENU, MASK_BASE_THICK)
        tr_s = jnp.transpose(tr, (1, 0, 2)).reshape(N, IN_CH * N)
        ti_s = jnp.transpose(ti, (1, 0, 2)).reshape(N, IN_CH * N)
        tr_list.append(jnp.tile(tr_s, (1, B)))
        ti_list.append(jnp.tile(ti_s, (1, B)))
    consts["t_r"] = jnp.stack(tr_list)                      # (NUM_MASKS, N, BC*N)
    consts["t_i"] = jnp.stack(ti_list)

    params = dict(w1=w1, w2=w2, emb=emb, scale=scale_param, consts=consts)

    out, scale = snapshot_forward(x, labels, params)
    out = jax.block_until_ready(out)
    scale = jax.block_until_ready(scale)

    assert out.shape == (B, IN_CH, IMG_SIZE, IMG_SIZE), out.shape
    assert bool(jnp.all(jnp.isfinite(out)))
    print("KERNEL_OK")
</pallas_src>

<mosaic_0001>
module attributes {stable_mosaic.version = 11 : i64} {
  func.func @_fused_kernel(%arg0: i32, %arg1: memref<8x32xf32, #tpu.memory_space<vmem>>, %arg2: memref<8x64xf32, #tpu.memory_space<vmem>>, %arg3: memref<32x64xbf16, #tpu.memory_space<vmem>>, %arg4: memref<64x32xbf16, #tpu.memory_space<vmem>>, %arg5: memref<32x8xbf16, #tpu.memory_space<vmem>>, %arg6: memref<32x8xbf16, #tpu.memory_space<vmem>>, %arg7: memref<32x128xbf16, #tpu.memory_space<vmem>>, %arg8: memref<32x128xbf16, #tpu.memory_space<vmem>>, %arg9: memref<32x32xbf16, #tpu.memory_space<vmem>>, %arg10: memref<32x32xbf16, #tpu.memory_space<vmem>>, %arg11: memref<128x128xbf16, #tpu.memory_space<vmem>>, %arg12: memref<128x128xbf16, #tpu.memory_space<vmem>>, %arg13: memref<32x32xbf16, #tpu.memory_space<vmem>>, %arg14: memref<32x32xbf16, #tpu.memory_space<vmem>>, %arg15: memref<128x128xbf16, #tpu.memory_space<vmem>>, %arg16: memref<128x128xbf16, #tpu.memory_space<vmem>>, %arg17: memref<3x32x128xf32, #tpu.memory_space<vmem>>, %arg18: memref<3x32x128xf32, #tpu.memory_space<vmem>>, %arg19: memref<2x32x128xf32, #tpu.memory_space<vmem>>, %arg20: memref<2x32x128xf32, #tpu.memory_space<vmem>>, %arg21: memref<8x32xbf16, #tpu.memory_space<vmem>>, %arg22: memref<128x128xbf16, #tpu.memory_space<vmem>>, %arg23: memref<8x128xf32, #tpu.memory_space<vmem>>) attributes {dimension_semantics = [#tpu.dimension_semantics<arbitrary>], iteration_bounds = array<i64: 1>, scalar_prefetch = 0 : i64, scratch_operands = 0 : i64, tpu.core_type = #tpu.core_type<tc>, window_params = [{pipeline_mode = #tpu.pipeline_mode<synchronous>, transform_indices = @transform_0, window_bounds = array<i64: 8, 32>}, {pipeline_mode = #tpu.pipeline_mode<synchronous>, transform_indices = @transform_1, window_bounds = array<i64: 8, 64>}, {pipeline_mode = #tpu.pipeline_mode<synchronous>, transform_indices = @transform_2, window_bounds = array<i64: 32, 64>}, {pipeline_mode = #tpu.pipeline_mode<synchronous>, transform_indices = @transform_3, window_bounds = array<i64: 64, 32>}, {pipeline_mode = #tpu.pipeline_mode<synchronous>, transform_indices = @transform_4, window_bounds = array<i64: 32, 8>}, {pipeline_mode = #tpu.pipeline_mode<synchronous>, transform_indices = @transform_5, window_bounds = array<i64: 32, 8>}, {pipeline_mode = #tpu.pipeline_mode<synchronous>, transform_indices = @transform_6, window_bounds = array<i64: 32, 128>}, {pipeline_mode = #tpu.pipeline_mode<synchronous>, transform_indices = @transform_7, window_bounds = array<i64: 32, 128>}, {pipeline_mode = #tpu.pipeline_mode<synchronous>, transform_indices = @transform_8, window_bounds = array<i64: 32, 32>}, {pipeline_mode = #tpu.pipeline_mode<synchronous>, transform_indices = @transform_9, window_bounds = array<i64: 32, 32>}, {pipeline_mode = #tpu.pipeline_mode<synchronous>, transform_indices = @transform_10, window_bounds = array<i64: 128, 128>}, {pipeline_mode = #tpu.pipeline_mode<synchronous>, transform_indices = @transform_11, window_bounds = array<i64: 128, 128>}, {pipeline_mode = #tpu.pipeline_mode<synchronous>, transform_indices = @transform_12, window_bounds = array<i64: 32, 32>}, {pipeline_mode = #tpu.pipeline_mode<synchronous>, transform_indices = @transform_13, window_bounds = array<i64: 32, 32>}, {pipeline_mode = #tpu.pipeline_mode<synchronous>, transform_indices = @transform_14, window_bounds = array<i64: 128, 128>}, {pipeline_mode = #tpu.pipeline_mode<synchronous>, transform_indices = @transform_15, window_bounds = array<i64: 128, 128>}, {pipeline_mode = #tpu.pipeline_mode<synchronous>, transform_indices = @transform_16, window_bounds = array<i64: 3, 32, 128>}, {pipeline_mode = #tpu.pipeline_mode<synchronous>, transform_indices = @transform_17, window_bounds = array<i64: 3, 32, 128>}, {pipeline_mode = #tpu.pipeline_mode<synchronous>, transform_indices = @transform_18, window_bounds = array<i64: 2, 32, 128>}, {pipeline_mode = #tpu.pipeline_mode<synchronous>, transform_indices = @transform_19, window_bounds = array<i64: 2, 32, 128>}, {pipeline_mode = #tpu.pipeline_mode<synchronous>, transform_indices = @transform_20, window_bounds = array<i64: 8, 32>}, {pipeline_mode = #tpu.pipeline_mode<synchronous>, transform_indices = @transform_21, window_bounds = array<i64: 128, 128>}, {pipeline_mode = #tpu.pipeline_mode<synchronous>, transform_indices = @transform_22, window_bounds = array<i64: 8, 128>}]} {
    %c0 = arith.constant 0 : index
    %c0_0 = arith.constant 0 : index
    %0 = vector.load %arg1[%c0, %c0_0] : memref<8x32xf32, #tpu.memory_space<vmem>>, vector<8x32xf32>
    %1 = arith.truncf %0 : vector<8x32xf32> to vector<8x32xbf16>
    %c0_1 = arith.constant 0 : index
    %c0_2 = arith.constant 0 : index
    %2 = vector.load %arg3[%c0_1, %c0_2] : memref<32x64xbf16, #tpu.memory_space<vmem>>, vector<32x64xbf16>
    %cst = arith.constant dense<0.000000e+00> : vector<8x64xf32>
    %3 = tpu.matmul %1, %2, %cst {dimension_numbers = #tpu.dot_dimension_numbers<[1], [0], [0], [1], [0, 0, 1, 1], [], []>} : vector<8x32xbf16>, vector<32x64xbf16>, vector<8x64xf32> -> vector<8x64xf32>
    %c0_3 = arith.constant 0 : index
    %c0_4 = arith.constant 0 : index
    %4 = vector.load %arg2[%c0_3, %c0_4] : memref<8x64xf32, #tpu.memory_space<vmem>>, vector<8x64xf32>
    %5 = arith.addf %3, %4 : vector<8x64xf32>
    %6 = arith.mulf %5, %5 : vector<8x64xf32>
    %7 = arith.mulf %5, %6 : vector<8x64xf32>
    %cst_5 = arith.constant 4.471500e-02 : f32
    %8 = vector.broadcast %cst_5 : f32 to vector<8x64xf32>
    %9 = arith.mulf %8, %7 : vector<8x64xf32>
    %10 = arith.addf %5, %9 : vector<8x64xf32>
    %cst_6 = arith.constant 0.797884583 : f32
    %11 = vector.broadcast %cst_6 : f32 to vector<8x64xf32>
    %12 = arith.mulf %11, %10 : vector<8x64xf32>
    %13 = math.tanh %12 : vector<8x64xf32>
    %cst_7 = arith.constant 1.000000e+00 : f32
    %14 = vector.broadcast %cst_7 : f32 to vector<8x64xf32>
    %15 = arith.addf %14, %13 : vector<8x64xf32>
    %cst_8 = arith.constant 5.000000e-01 : f32
    %16 = vector.broadcast %cst_8 : f32 to vector<8x64xf32>
    %17 = arith.mulf %16, %15 : vector<8x64xf32>
    %18 = arith.mulf %5, %17 : vector<8x64xf32>
    %19 = arith.truncf %18 : vector<8x64xf32> to vector<8x64xbf16>
    %c0_9 = arith.constant 0 : index
    %c0_10 = arith.constant 0 : index
    %20 = vector.load %arg4[%c0_9, %c0_10] : memref<64x32xbf16, #tpu.memory_space<vmem>>, vector<64x32xbf16>
    %cst_11 = arith.constant dense<0.000000e+00> : vector<8x32xf32>
    %21 = tpu.matmul %19, %20, %cst_11 {dimension_numbers = #tpu.dot_dimension_numbers<[1], [0], [0], [1], [0, 0, 1, 1], [], []>} : vector<8x64xbf16>, vector<64x32xbf16>, vector<8x32xf32> -> vector<8x32xf32>
    %22 = math.tanh %21 : vector<8x32xf32>
    %cst_12 = arith.constant 3.14159274 : f32
    %23 = vector.broadcast %cst_12 : f32 to vector<8x32xf32>
    %24 = arith.mulf %22, %23 : vector<8x32xf32>
    %cst_13 = arith.constant 3.14159274 : f32
    %25 = vector.broadcast %cst_13 : f32 to vector<8x32xf32>
    %26 = arith.addf %24, %25 : vector<8x32xf32>
    %cst_14 = arith.constant 0.000000e+00 : f32
    %cst_15 = arith.constant 6.28318548 : f32
    %27 = vector.broadcast %cst_14 : f32 to vector<8x32xf32>
    %28 = arith.maximumf %27, %26 : vector<8x32xf32>
    %29 = vector.broadcast %cst_15 : f32 to vector<8x32xf32>
    %30 = arith.minimumf %29, %28 : vector<8x32xf32>
    %31 = math.cos %30 : vector<8x32xf32>
    %32 = math.sin %30 : vector<8x32xf32>
    %c0_16 = arith.constant 0 : index
    %c0_17 = arith.constant 0 : index
    %33 = vector.load %arg5[%c0_16, %c0_17] : memref<32x8xbf16, #tpu.memory_space<vmem>>, vector<32x8xbf16>
    %c0_18 = arith.constant 0 : index
    %c0_19 = arith.constant 0 : index
    %34 = vector.load %arg6[%c0_18, %c0_19] : memref<32x8xbf16, #tpu.memory_space<vmem>>, vector<32x8xbf16>
    %35 = arith.truncf %31 : vector<8x32xf32> to vector<8x32xbf16>
    %36 = arith.truncf %32 : vector<8x32xf32> to vector<8x32xbf16>
    %cst_20 = arith.constant dense<0.000000e+00> : vector<32x32xf32>
    %37 = tpu.matmul %33, %35, %cst_20 {dimension_numbers = #tpu.dot_dimension_numbers<[1], [0], [0], [1], [0, 0, 1, 1], [], []>} : vector<32x8xbf16>, vector<8x32xbf16>, vector<32x32xf32> -> vector<32x32xf32>
    %cst_21 = arith.constant dense<0.000000e+00> : vector<32x32xf32>
    %38 = tpu.matmul %34, %36, %cst_21 {dimension_numbers = #tpu.dot_dimension_numbers<[1], [0], [0], [1], [0, 0, 1, 1], [], []>} : vector<32x8xbf16>, vector<8x32xbf16>, vector<32x32xf32> -> vector<32x32xf32>
    %cst_22 = arith.constant dense<0.000000e+00> : vector<32x32xf32>
    %39 = tpu.matmul %33, %36, %cst_22 {dimension_numbers = #tpu.dot_dimension_numbers<[1], [0], [0], [1], [0, 0, 1, 1], [], []>} : vector<32x8xbf16>, vector<8x32xbf16>, vector<32x32xf32> -> vector<32x32xf32>
    %cst_23 = arith.constant dense<0.000000e+00> : vector<32x32xf32>
    %40 = tpu.matmul %34, %35, %cst_23 {dimension_numbers = #tpu.dot_dimension_numbers<[1], [0], [0], [1], [0, 0, 1, 1], [], []>} : vector<32x8xbf16>, vector<8x32xbf16>, vector<32x32xf32> -> vector<32x32xf32>
    %41 = arith.subf %37, %38 : vector<32x32xf32>
    %42 = arith.addf %39, %40 : vector<32x32xf32>
    %c0_24 = arith.constant 0 : index
    %c0_25 = arith.constant 0 : index
    %43 = vector.load %arg7[%c0_24, %c0_25] : memref<32x128xbf16, #tpu.memory_space<vmem>>, vector<32x128xbf16>
    %c0_26 = arith.constant 0 : index
    %c0_27 = arith.constant 0 : index
    %44 = vector.load %arg8[%c0_26, %c0_27] : memref<32x128xbf16, #tpu.memory_space<vmem>>, vector<32x128xbf16>
    %45 = arith.truncf %41 : vector<32x32xf32> to vector<32x32xbf16>
    %46 = arith.truncf %42 : vector<32x32xf32> to vector<32x32xbf16>
    %cst_28 = arith.constant dense<0.000000e+00> : vector<32x128xf32>
    %47 = tpu.matmul %45, %43, %cst_28 {dimension_numbers = #tpu.dot_dimension_numbers<[1], [0], [0], [1], [0, 0, 1, 1], [], []>} : vector<32x32xbf16>, vector<32x128xbf16>, vector<32x128xf32> -> vector<32x128xf32>
    %cst_29 = arith.constant dense<0.000000e+00> : vector<32x128xf32>
    %48 = tpu.matmul %46, %44, %cst_29 {dimension_numbers = #tpu.dot_dimension_numbers<[1], [0], [0], [1], [0, 0, 1, 1], [], []>} : vector<32x32xbf16>, vector<32x128xbf16>, vector<32x128xf32> -> vector<32x128xf32>
    %cst_30 = arith.constant dense<0.000000e+00> : vector<32x128xf32>
    %49 = tpu.matmul %45, %44, %cst_30 {dimension_numbers = #tpu.dot_dimension_numbers<[1], [0], [0], [1], [0, 0, 1, 1], [], []>} : vector<32x32xbf16>, vector<32x128xbf16>, vector<32x128xf32> -> vector<32x128xf32>
    %cst_31 = arith.constant dense<0.000000e+00> : vector<32x128xf32>
    %50 = tpu.matmul %46, %43, %cst_31 {dimension_numbers = #tpu.dot_dimension_numbers<[1], [0], [0], [1], [0, 0, 1, 1], [], []>} : vector<32x32xbf16>, vector<32x128xbf16>, vector<32x128xf32> -> vector<32x128xf32>
    %51 = arith.subf %47, %48 : vector<32x128xf32>
    %52 = arith.addf %49, %50 : vector<32x128xf32>
    %c0_32 = arith.constant 0 : index
    %c0_33 = arith.constant 0 : index
    %c0_34 = arith.constant 0 : index
    %53 = vector.load %arg17[%c0_32, %c0_33, %c0_34] : memref<3x32x128xf32, #tpu.memory_space<vmem>>, vector<1x32x128xf32>
    %54 = vector.shape_cast %53 : vector<1x32x128xf32> to vector<32x128xf32>
    %c0_35 = arith.constant 0 : index
    %c0_36 = arith.constant 0 : index
    %c0_37 = arith.constant 0 : index
    %55 = vector.load %arg18[%c0_35, %c0_36, %c0_37] : memref<3x32x128xf32, #tpu.memory_space<vmem>>, vector<1x32x128xf32>
    %56 = vector.shape_cast %55 : vector<1x32x128xf32> to vector<32x128xf32>
    %57 = arith.mulf %51, %54 : vector<32x128xf32>
    %58 = arith.mulf %52, %56 : vector<32x128xf32>
    %59 = arith.subf %57, %58 : vector<32x128xf32>
    %60 = arith.mulf %51, %56 : vector<32x128xf32>
    %61 = arith.mulf %52, %54 : vector<32x128xf32>
    %62 = arith.addf %60, %61 : vector<32x128xf32>
    %c0_38 = arith.constant 0 : index
    %c0_39 = arith.constant 0 : index
    %63 = vector.load %arg13[%c0_38, %c0_39] : memref<32x32xbf16, #tpu.memory_space<vmem>>, vector<32x32xbf16>
    %c0_40 = arith.constant 0 : index
    %c0_41 = arith.constant 0 : index
    %64 = vector.load %arg14[%c0_40, %c0_41] : memref<32x32xbf16, #tpu.memory_space<vmem>>, vector<32x32xbf16>
    %65 = arith.truncf %59 : vector<32x128xf32> to vector<32x128xbf16>
    %66 = arith.truncf %62 : vector<32x128xf32> to vector<32x128xbf16>
    %cst_42 = arith.constant dense<0.000000e+00> : vector<32x128xf32>
    %67 = tpu.matmul %63, %65, %cst_42 {dimension_numbers = #tpu.dot_dimension_numbers<[1], [0], [0], [1], [0, 0, 1, 1], [], []>} : vector<32x32xbf16>, vector<32x128xbf16>, vector<32x128xf32> -> vector<32x128xf32>
    %cst_43 = arith.constant dense<0.000000e+00> : vector<32x128xf32>
    %68 = tpu.matmul %64, %66, %cst_43 {dimension_numbers = #tpu.dot_dimension_numbers<[1], [0], [0], [1], [0, 0, 1, 1], [], []>} : vector<32x32xbf16>, vector<32x128xbf16>, vector<32x128xf32> -> vector<32x128xf32>
    %cst_44 = arith.constant dense<0.000000e+00> : vector<32x128xf32>
    %69 = tpu.matmul %63, %66, %cst_44 {dimension_numbers = #tpu.dot_dimension_numbers<[1], [0], [0], [1], [0, 0, 1, 1], [], []>} : vector<32x32xbf16>, vector<32x128xbf16>, vector<32x128xf32> -> vector<32x128xf32>
    %cst_45 = arith.constant dense<0.000000e+00> : vector<32x128xf32>
    %70 = tpu.matmul %64, %65, %cst_45 {dimension_numbers = #tpu.dot_dimension_numbers<[1], [0], [0], [1], [0, 0, 1, 1], [], []>} : vector<32x32xbf16>, vector<32x128xbf16>, vector<32x128xf32> -> vector<32x128xf32>
    %71 = arith.subf %67, %68 : vector<32x128xf32>
    %72 = arith.addf %69, %70 : vector<32x128xf32>
    %c0_46 = arith.constant 0 : index
    %c0_47 = arith.constant 0 : index
    %73 = vector.load %arg15[%c0_46, %c0_47] : memref<128x128xbf16, #tpu.memory_space<vmem>>, vector<128x128xbf16>
    %c0_48 = arith.constant 0 : index
    %c0_49 = arith.constant 0 : index
    %74 = vector.load %arg16[%c0_48, %c0_49] : memref<128x128xbf16, #tpu.memory_space<vmem>>, vector<128x128xbf16>
    %75 = arith.truncf %71 : vector<32x128xf32> to vector<32x128xbf16>
    %76 = arith.truncf %72 : vector<32x128xf32> to vector<32x128xbf16>
    %cst_50 = arith.constant dense<0.000000e+00> : vector<32x128xf32>
    %77 = tpu.matmul %75, %73, %cst_50 {dimension_numbers = #tpu.dot_dimension_numbers<[1], [0], [0], [1], [0, 0, 1, 1], [], []>} : vector<32x128xbf16>, vector<128x128xbf16>, vector<32x128xf32> -> vector<32x128xf32>
    %cst_51 = arith.constant dense<0.000000e+00> : vector<32x128xf32>
    %78 = tpu.matmul %76, %74, %cst_51 {dimension_numbers = #tpu.dot_dimension_numbers<[1], [0], [0], [1], [0, 0, 1, 1], [], []>} : vector<32x128xbf16>, vector<128x128xbf16>, vector<32x128xf32> -> vector<32x128xf32>
    %cst_52 = arith.constant dense<0.000000e+00> : vector<32x128xf32>
    %79 = tpu.matmul %75, %74, %cst_52 {dimension_numbers = #tpu.dot_dimension_numbers<[1], [0], [0], [1], [0, 0, 1, 1], [], []>} : vector<32x128xbf16>, vector<128x128xbf16>, vector<32x128xf32> -> vector<32x128xf32>
    %cst_53 = arith.constant dense<0.000000e+00> : vector<32x128xf32>
    %80 = tpu.matmul %76, %73, %cst_53 {dimension_numbers = #tpu.dot_dimension_numbers<[1], [0], [0], [1], [0, 0, 1, 1], [], []>} : vector<32x128xbf16>, vector<128x128xbf16>, vector<32x128xf32> -> vector<32x128xf32>
    %81 = arith.subf %77, %78 : vector<32x128xf32>
    %82 = arith.addf %79, %80 : vector<32x128xf32>
    %c0_54 = arith.constant 0 : index
    %c0_55 = arith.constant 0 : index
    %c0_56 = arith.constant 0 : index
    %83 = vector.load %arg19[%c0_54, %c0_55, %c0_56] : memref<2x32x128xf32, #tpu.memory_space<vmem>>, vector<1x32x128xf32>
    %84 = vector.shape_cast %83 : vector<1x32x128xf32> to vector<32x128xf32>
    %c0_57 = arith.constant 0 : index
    %c0_58 = arith.constant 0 : index
    %c0_59 = arith.constant 0 : index
    %85 = vector.load %arg20[%c0_57, %c0_58, %c0_59] : memref<2x32x128xf32, #tpu.memory_space<vmem>>, vector<1x32x128xf32>
    %86 = vector.shape_cast %85 : vector<1x32x128xf32> to vector<32x128xf32>
    %87 = arith.mulf %81, %84 : vector<32x128xf32>
    %88 = arith.mulf %82, %86 : vector<32x128xf32>
    %89 = arith.subf %87, %88 : vector<32x128xf32>
    %90 = arith.mulf %81, %86 : vector<32x128xf32>
    %91 = arith.mulf %82, %84 : vector<32x128xf32>
    %92 = arith.addf %90, %91 : vector<32x128xf32>
    %c0_60 = arith.constant 0 : index
    %c0_61 = arith.constant 0 : index
    %93 = vector.load %arg9[%c0_60, %c0_61] : memref<32x32xbf16, #tpu.memory_space<vmem>>, vector<32x32xbf16>
    %c0_62 = arith.constant 0 : index
    %c0_63 = arith.constant 0 : index
    %94 = vector.load %arg10[%c0_62, %c0_63] : memref<32x32xbf16, #tpu.memory_space<vmem>>, vector<32x32xbf16>
    %95 = arith.truncf %89 : vector<32x128xf32> to vector<32x128xbf16>
    %96 = arith.truncf %92 : vector<32x128xf32> to vector<32x128xbf16>
    %cst_64 = arith.constant dense<0.000000e+00> : vector<32x128xf32>
    %97 = tpu.matmul %93, %95, %cst_64 {dimension_numbers = #tpu.dot_dimension_numbers<[1], [0], [0], [1], [0, 0, 1, 1], [], []>} : vector<32x32xbf16>, vector<32x128xbf16>, vector<32x128xf32> -> vector<32x128xf32>
    %cst_65 = arith.constant dense<0.000000e+00> : vector<32x128xf32>
    %98 = tpu.matmul %94, %96, %cst_65 {dimension_numbers = #tpu.dot_dimension_numbers<[1], [0], [0], [1], [0, 0, 1, 1], [], []>} : vector<32x32xbf16>, vector<32x128xbf16>, vector<32x128xf32> -> vector<32x128xf32>
    %cst_66 = arith.constant dense<0.000000e+00> : vector<32x128xf32>
    %99 = tpu.matmul %93, %96, %cst_66 {dimension_numbers = #tpu.dot_dimension_numbers<[1], [0], [0], [1], [0, 0, 1, 1], [], []>} : vector<32x32xbf16>, vector<32x128xbf16>, vector<32x128xf32> -> vector<32x128xf32>
    %cst_67 = arith.constant dense<0.000000e+00> : vector<32x128xf32>
    %100 = tpu.matmul %94, %95, %cst_67 {dimension_numbers = #tpu.dot_dimension_numbers<[1], [0], [0], [1], [0, 0, 1, 1], [], []>} : vector<32x32xbf16>, vector<32x128xbf16>, vector<32x128xf32> -> vector<32x128xf32>
    %101 = arith.subf %97, %98 : vector<32x128xf32>
    %102 = arith.addf %99, %100 : vector<32x128xf32>
    %c0_68 = arith.constant 0 : index
    %c0_69 = arith.constant 0 : index
    %103 = vector.load %arg11[%c0_68, %c0_69] : memref<128x128xbf16, #tpu.memory_space<vmem>>, vector<128x128xbf16>
    %c0_70 = arith.constant 0 : index
    %c0_71 = arith.constant 0 : index
    %104 = vector.load %arg12[%c0_70, %c0_71] : memref<128x128xbf16, #tpu.memory_space<vmem>>, vector<128x128xbf16>
    %105 = arith.truncf %101 : vector<32x128xf32> to vector<32x128xbf16>
    %106 = arith.truncf %102 : vector<32x128xf32> to vector<32x128xbf16>
    %cst_72 = arith.constant dense<0.000000e+00> : vector<32x128xf32>
    %107 = tpu.matmul %105, %103, %cst_72 {dimension_numbers = #tpu.dot_dimension_numbers<[1], [0], [0], [1], [0, 0, 1, 1], [], []>} : vector<32x128xbf16>, vector<128x128xbf16>, vector<32x128xf32> -> vector<32x128xf32>
    %cst_73 = arith.constant dense<0.000000e+00> : vector<32x128xf32>
    %108 = tpu.matmul %106, %104, %cst_73 {dimension_numbers = #tpu.dot_dimension_numbers<[1], [0], [0], [1], [0, 0, 1, 1], [], []>} : vector<32x128xbf16>, vector<128x128xbf16>, vector<32x128xf32> -> vector<32x128xf32>
    %cst_74 = arith.constant dense<0.000000e+00> : vector<32x128xf32>
    %109 = tpu.matmul %105, %104, %cst_74 {dimension_numbers = #tpu.dot_dimension_numbers<[1], [0], [0], [1], [0, 0, 1, 1], [], []>} : vector<32x128xbf16>, vector<128x128xbf16>, vector<32x128xf32> -> vector<32x128xf32>
    %cst_75 = arith.constant dense<0.000000e+00> : vector<32x128xf32>
    %110 = tpu.matmul %106, %103, %cst_75 {dimension_numbers = #tpu.dot_dimension_numbers<[1], [0], [0], [1], [0, 0, 1, 1], [], []>} : vector<32x128xbf16>, vector<128x128xbf16>, vector<32x128xf32> -> vector<32x128xf32>
    %111 = arith.subf %107, %108 : vector<32x128xf32>
    %112 = arith.addf %109, %110 : vector<32x128xf32>
    %c1 = arith.constant 1 : index
    %c0_76 = arith.constant 0 : index
    %c0_77 = arith.constant 0 : index
    %113 = vector.load %arg17[%c1, %c0_76, %c0_77] : memref<3x32x128xf32, #tpu.memory_space<vmem>>, vector<1x32x128xf32>
    %114 = vector.shape_cast %113 : vector<1x32x128xf32> to vector<32x128xf32>
    %c1_78 = arith.constant 1 : index
    %c0_79 = arith.constant 0 : index
    %c0_80 = arith.constant 0 : index
    %115 = vector.load %arg18[%c1_78, %c0_79, %c0_80] : memref<3x32x128xf32, #tpu.memory_space<vmem>>, vector<1x32x128xf32>
    %116 = vector.shape_cast %115 : vector<1x32x128xf32> to vector<32x128xf32>
    %117 = arith.mulf %111, %114 : vector<32x128xf32>
    %118 = arith.mulf %112, %116 : vector<32x128xf32>
    %119 = arith.subf %117, %118 : vector<32x128xf32>
    %120 = arith.mulf %111, %116 : vector<32x128xf32>
    %121 = arith.mulf %112, %114 : vector<32x128xf32>
    %122 = arith.addf %120, %121 : vector<32x128xf32>
    %c0_81 = arith.constant 0 : index
    %c0_82 = arith.constant 0 : index
    %123 = vector.load %arg13[%c0_81, %c0_82] : memref<32x32xbf16, #tpu.memory_space<vmem>>, vector<32x32xbf16>
    %c0_83 = arith.constant 0 : index
    %c0_84 = arith.constant 0 : index
    %124 = vector.load %arg14[%c0_83, %c0_84] : memref<32x32xbf16, #tpu.memory_space<vmem>>, vector<32x32xbf16>
    %125 = arith.truncf %119 : vector<32x128xf32> to vector<32x128xbf16>
    %126 = arith.truncf %122 : vector<32x128xf32> to vector<32x128xbf16>
    %cst_85 = arith.constant dense<0.000000e+00> : vector<32x128xf32>
    %127 = tpu.matmul %123, %125, %cst_85 {dimension_numbers = #tpu.dot_dimension_numbers<[1], [0], [0], [1], [0, 0, 1, 1], [], []>} : vector<32x32xbf16>, vector<32x128xbf16>, vector<32x128xf32> -> vector<32x128xf32>
    %cst_86 = arith.constant dense<0.000000e+00> : vector<32x128xf32>
    %128 = tpu.matmul %124, %126, %cst_86 {dimension_numbers = #tpu.dot_dimension_numbers<[1], [0], [0], [1], [0, 0, 1, 1], [], []>} : vector<32x32xbf16>, vector<32x128xbf16>, vector<32x128xf32> -> vector<32x128xf32>
    %cst_87 = arith.constant dense<0.000000e+00> : vector<32x128xf32>
    %129 = tpu.matmul %123, %126, %cst_87 {dimension_numbers = #tpu.dot_dimension_numbers<[1], [0], [0], [1], [0, 0, 1, 1], [], []>} : vector<32x32xbf16>, vector<32x128xbf16>, vector<32x128xf32> -> vector<32x128xf32>
    %cst_88 = arith.constant dense<0.000000e+00> : vector<32x128xf32>
    %130 = tpu.matmul %124, %125, %cst_88 {dimension_numbers = #tpu.dot_dimension_numbers<[1], [0], [0], [1], [0, 0, 1, 1], [], []>} : vector<32x32xbf16>, vector<32x128xbf16>, vector<32x128xf32> -> vector<32x128xf32>
    %131 = arith.subf %127, %128 : vector<32x128xf32>
    %132 = arith.addf %129, %130 : vector<32x128xf32>
    %c0_89 = arith.constant 0 : index
    %c0_90 = arith.constant 0 : index
    %133 = vector.load %arg15[%c0_89, %c0_90] : memref<128x128xbf16, #tpu.memory_space<vmem>>, vector<128x128xbf16>
    %c0_91 = arith.constant 0 : index
    %c0_92 = arith.constant 0 : index
    %134 = vector.load %arg16[%c0_91, %c0_92] : memref<128x128xbf16, #tpu.memory_space<vmem>>, vector<128x128xbf16>
    %135 = arith.truncf %131 : vector<32x128xf32> to vector<32x128xbf16>
    %136 = arith.truncf %132 : vector<32x128xf32> to vector<32x128xbf16>
    %cst_93 = arith.constant dense<0.000000e+00> : vector<32x128xf32>
    %137 = tpu.matmul %135, %133, %cst_93 {dimension_numbers = #tpu.dot_dimension_numbers<[1], [0], [0], [1], [0, 0, 1, 1], [], []>} : vector<32x128xbf16>, vector<128x128xbf16>, vector<32x128xf32> -> vector<32x128xf32>
    %cst_94 = arith.constant dense<0.000000e+00> : vector<32x128xf32>
    %138 = tpu.matmul %136, %134, %cst_94 {dimension_numbers = #tpu.dot_dimension_numbers<[1], [0], [0], [1], [0, 0, 1, 1], [], []>} : vector<32x128xbf16>, vector<128x128xbf16>, vector<32x128xf32> -> vector<32x128xf32>
    %cst_95 = arith.constant dense<0.000000e+00> : vector<32x128xf32>
    %139 = tpu.matmul %135, %134, %cst_95 {dimension_numbers = #tpu.dot_dimension_numbers<[1], [0], [0], [1], [0, 0, 1, 1], [], []>} : vector<32x128xbf16>, vector<128x128xbf16>, vector<32x128xf32> -> vector<32x128xf32>
    %cst_96 = arith.constant dense<0.000000e+00> : vector<32x128xf32>
    %140 = tpu.matmul %136, %133, %cst_96 {dimension_numbers = #tpu.dot_dimension_numbers<[1], [0], [0], [1], [0, 0, 1, 1], [], []>} : vector<32x128xbf16>, vector<128x128xbf16>, vector<32x128xf32> -> vector<32x128xf32>
    %141 = arith.subf %137, %138 : vector<32x128xf32>
    %142 = arith.addf %139, %140 : vector<32x128xf32>
    %c1_97 = arith.constant 1 : index
    %c0_98 = arith.constant 0 : index
    %c0_99 = arith.constant 0 : index
    %143 = vector.load %arg19[%c1_97, %c0_98, %c0_99] : memref<2x32x128xf32, #tpu.memory_space<vmem>>, vector<1x32x128xf32>
    %144 = vector.shape_cast %143 : vector<1x32x128xf32> to vector<32x128xf32>
    %c1_100 = arith.constant 1 : index
    %c0_101 = arith.constant 0 : index
    %c0_102 = arith.constant 0 : index
    %145 = vector.load %arg20[%c1_100, %c0_101, %c0_102] : memref<2x32x128xf32, #tpu.memory_space<vmem>>, vector<1x32x128xf32>
    %146 = vector.shape_cast %145 : vector<1x32x128xf32> to vector<32x128xf32>
    %147 = arith.mulf %141, %144 : vector<32x128xf32>
    %148 = arith.mulf %142, %146 : vector<32x128xf32>
    %149 = arith.subf %147, %148 : vector<32x128xf32>
    %150 = arith.mulf %141, %146 : vector<32x128xf32>
    %151 = arith.mulf %142, %144 : vector<32x128xf32>
    %152 = arith.addf %150, %151 : vector<32x128xf32>
    %c0_103 = arith.constant 0 : index
    %c0_104 = arith.constant 0 : index
    %153 = vector.load %arg9[%c0_103, %c0_104] : memref<32x32xbf16, #tpu.memory_space<vmem>>, vector<32x32xbf16>
    %c0_105 = arith.constant 0 : index
    %c0_106 = arith.constant 0 : index
    %154 = vector.load %arg10[%c0_105, %c0_106] : memref<32x32xbf16, #tpu.memory_space<vmem>>, vector<32x32xbf16>
    %155 = arith.truncf %149 : vector<32x128xf32> to vector<32x128xbf16>
    %156 = arith.truncf %152 : vector<32x128xf32> to vector<32x128xbf16>
    %cst_107 = arith.constant dense<0.000000e+00> : vector<32x128xf32>
    %157 = tpu.matmul %153, %155, %cst_107 {dimension_numbers = #tpu.dot_dimension_numbers<[1], [0], [0], [1], [0, 0, 1, 1], [], []>} : vector<32x32xbf16>, vector<32x128xbf16>, vector<32x128xf32> -> vector<32x128xf32>
    %cst_108 = arith.constant dense<0.000000e+00> : vector<32x128xf32>
    %158 = tpu.matmul %154, %156, %cst_108 {dimension_numbers = #tpu.dot_dimension_numbers<[1], [0], [0], [1], [0, 0, 1, 1], [], []>} : vector<32x32xbf16>, vector<32x128xbf16>, vector<32x128xf32> -> vector<32x128xf32>
    %cst_109 = arith.constant dense<0.000000e+00> : vector<32x128xf32>
    %159 = tpu.matmul %153, %156, %cst_109 {dimension_numbers = #tpu.dot_dimension_numbers<[1], [0], [0], [1], [0, 0, 1, 1], [], []>} : vector<32x32xbf16>, vector<32x128xbf16>, vector<32x128xf32> -> vector<32x128xf32>
    %cst_110 = arith.constant dense<0.000000e+00> : vector<32x128xf32>
    %160 = tpu.matmul %154, %155, %cst_110 {dimension_numbers = #tpu.dot_dimension_numbers<[1], [0], [0], [1], [0, 0, 1, 1], [], []>} : vector<32x32xbf16>, vector<32x128xbf16>, vector<32x128xf32> -> vector<32x128xf32>
    %161 = arith.subf %157, %158 : vector<32x128xf32>
    %162 = arith.addf %159, %160 : vector<32x128xf32>
    %c0_111 = arith.constant 0 : index
    %c0_112 = arith.constant 0 : index
    %163 = vector.load %arg11[%c0_111, %c0_112] : memref<128x128xbf16, #tpu.memory_space<vmem>>, vector<128x128xbf16>
    %c0_113 = arith.constant 0 : index
    %c0_114 = arith.constant 0 : index
    %164 = vector.load %arg12[%c0_113, %c0_114] : memref<128x128xbf16, #tpu.memory_space<vmem>>, vector<128x128xbf16>
    %165 = arith.truncf %161 : vector<32x128xf32> to vector<32x128xbf16>
    %166 = arith.truncf %162 : vector<32x128xf32> to vector<32x128xbf16>
    %cst_115 = arith.constant dense<0.000000e+00> : vector<32x128xf32>
    %167 = tpu.matmul %165, %163, %cst_115 {dimension_numbers = #tpu.dot_dimension_numbers<[1], [0], [0], [1], [0, 0, 1, 1], [], []>} : vector<32x128xbf16>, vector<128x128xbf16>, vector<32x128xf32> -> vector<32x128xf32>
    %cst_116 = arith.constant dense<0.000000e+00> : vector<32x128xf32>
    %168 = tpu.matmul %166, %164, %cst_116 {dimension_numbers = #tpu.dot_dimension_numbers<[1], [0], [0], [1], [0, 0, 1, 1], [], []>} : vector<32x128xbf16>, vector<128x128xbf16>, vector<32x128xf32> -> vector<32x128xf32>
    %cst_117 = arith.constant dense<0.000000e+00> : vector<32x128xf32>
    %169 = tpu.matmul %165, %164, %cst_117 {dimension_numbers = #tpu.dot_dimension_numbers<[1], [0], [0], [1], [0, 0, 1, 1], [], []>} : vector<32x128xbf16>, vector<128x128xbf16>, vector<32x128xf32> -> vector<32x128xf32>
    %cst_118 = arith.constant dense<0.000000e+00> : vector<32x128xf32>
    %170 = tpu.matmul %166, %163, %cst_118 {dimension_numbers = #tpu.dot_dimension_numbers<[1], [0], [0], [1], [0, 0, 1, 1], [], []>} : vector<32x128xbf16>, vector<128x128xbf16>, vector<32x128xf32> -> vector<32x128xf32>
    %171 = arith.subf %167, %168 : vector<32x128xf32>
    %172 = arith.addf %169, %170 : vector<32x128xf32>
    %c2 = arith.constant 2 : index
    %c0_119 = arith.constant 0 : index
    %c0_120 = arith.constant 0 : index
    %173 = vector.load %arg17[%c2, %c0_119, %c0_120] : memref<3x32x128xf32, #tpu.memory_space<vmem>>, vector<1x32x128xf32>
    %174 = vector.shape_cast %173 : vector<1x32x128xf32> to vector<32x128xf32>
    %c2_121 = arith.constant 2 : index
    %c0_122 = arith.constant 0 : index
    %c0_123 = arith.constant 0 : index
    %175 = vector.load %arg18[%c2_121, %c0_122, %c0_123] : memref<3x32x128xf32, #tpu.memory_space<vmem>>, vector<1x32x128xf32>
    %176 = vector.shape_cast %175 : vector<1x32x128xf32> to vector<32x128xf32>
    %177 = arith.mulf %171, %174 : vector<32x128xf32>
    %178 = arith.mulf %172, %176 : vector<32x128xf32>
    %179 = arith.subf %177, %178 : vector<32x128xf32>
    %180 = arith.mulf %171, %176 : vector<32x128xf32>
    %181 = arith.mulf %172, %174 : vector<32x128xf32>
    %182 = arith.addf %180, %181 : vector<32x128xf32>
    %c0_124 = arith.constant 0 : index
    %c0_125 = arith.constant 0 : index
    %183 = vector.load %arg13[%c0_124, %c0_125] : memref<32x32xbf16, #tpu.memory_space<vmem>>, vector<32x32xbf16>
    %c0_126 = arith.constant 0 : index
    %c0_127 = arith.constant 0 : index
    %184 = vector.load %arg14[%c0_126, %c0_127] : memref<32x32xbf16, #tpu.memory_space<vmem>>, vector<32x32xbf16>
    %185 = arith.truncf %179 : vector<32x128xf32> to vector<32x128xbf16>
    %186 = arith.truncf %182 : vector<32x128xf32> to vector<32x128xbf16>
    %cst_128 = arith.constant dense<0.000000e+00> : vector<32x128xf32>
    %187 = tpu.matmul %183, %185, %cst_128 {dimension_numbers = #tpu.dot_dimension_numbers<[1], [0], [0], [1], [0, 0, 1, 1], [], []>} : vector<32x32xbf16>, vector<32x128xbf16>, vector<32x128xf32> -> vector<32x128xf32>
    %cst_129 = arith.constant dense<0.000000e+00> : vector<32x128xf32>
    %188 = tpu.matmul %184, %186, %cst_129 {dimension_numbers = #tpu.dot_dimension_numbers<[1], [0], [0], [1], [0, 0, 1, 1], [], []>} : vector<32x32xbf16>, vector<32x128xbf16>, vector<32x128xf32> -> vector<32x128xf32>
    %cst_130 = arith.constant dense<0.000000e+00> : vector<32x128xf32>
    %189 = tpu.matmul %183, %186, %cst_130 {dimension_numbers = #tpu.dot_dimension_numbers<[1], [0], [0], [1], [0, 0, 1, 1], [], []>} : vector<32x32xbf16>, vector<32x128xbf16>, vector<32x128xf32> -> vector<32x128xf32>
    %cst_131 = arith.constant dense<0.000000e+00> : vector<32x128xf32>
    %190 = tpu.matmul %184, %185, %cst_131 {dimension_numbers = #tpu.dot_dimension_numbers<[1], [0], [0], [1], [0, 0, 1, 1], [], []>} : vector<32x32xbf16>, vector<32x128xbf16>, vector<32x128xf32> -> vector<32x128xf32>
    %191 = arith.subf %187, %188 : vector<32x128xf32>
    %192 = arith.addf %189, %190 : vector<32x128xf32>
    %c0_132 = arith.constant 0 : index
    %c0_133 = arith.constant 0 : index
    %193 = vector.load %arg15[%c0_132, %c0_133] : memref<128x128xbf16, #tpu.memory_space<vmem>>, vector<128x128xbf16>
    %c0_134 = arith.constant 0 : index
    %c0_135 = arith.constant 0 : index
    %194 = vector.load %arg16[%c0_134, %c0_135] : memref<128x128xbf16, #tpu.memory_space<vmem>>, vector<128x128xbf16>
    %195 = arith.truncf %191 : vector<32x128xf32> to vector<32x128xbf16>
    %196 = arith.truncf %192 : vector<32x128xf32> to vector<32x128xbf16>
    %cst_136 = arith.constant dense<0.000000e+00> : vector<32x128xf32>
    %197 = tpu.matmul %195, %193, %cst_136 {dimension_numbers = #tpu.dot_dimension_numbers<[1], [0], [0], [1], [0, 0, 1, 1], [], []>} : vector<32x128xbf16>, vector<128x128xbf16>, vector<32x128xf32> -> vector<32x128xf32>
    %cst_137 = arith.constant dense<0.000000e+00> : vector<32x128xf32>
    %198 = tpu.matmul %196, %194, %cst_137 {dimension_numbers = #tpu.dot_dimension_numbers<[1], [0], [0], [1], [0, 0, 1, 1], [], []>} : vector<32x128xbf16>, vector<128x128xbf16>, vector<32x128xf32> -> vector<32x128xf32>
    %cst_138 = arith.constant dense<0.000000e+00> : vector<32x128xf32>
    %199 = tpu.matmul %195, %194, %cst_138 {dimension_numbers = #tpu.dot_dimension_numbers<[1], [0], [0], [1], [0, 0, 1, 1], [], []>} : vector<32x128xbf16>, vector<128x128xbf16>, vector<32x128xf32> -> vector<32x128xf32>
    %cst_139 = arith.constant dense<0.000000e+00> : vector<32x128xf32>
    %200 = tpu.matmul %196, %193, %cst_139 {dimension_numbers = #tpu.dot_dimension_numbers<[1], [0], [0], [1], [0, 0, 1, 1], [], []>} : vector<32x128xbf16>, vector<128x128xbf16>, vector<32x128xf32> -> vector<32x128xf32>
    %201 = arith.subf %197, %198 : vector<32x128xf32>
    %202 = arith.addf %199, %200 : vector<32x128xf32>
    %203 = arith.mulf %201, %201 : vector<32x128xf32>
    %204 = arith.mulf %202, %202 : vector<32x128xf32>
    %205 = arith.addf %203, %204 : vector<32x128xf32>
    %206 = math.sqrt %205 : vector<32x128xf32>
    %c0_140 = arith.constant 0 : index
    %c0_141 = arith.constant 0 : index
    %207 = vector.load %arg21[%c0_140, %c0_141] : memref<8x32xbf16, #tpu.memory_space<vmem>>, vector<8x32xbf16>
    %208 = arith.truncf %206 : vector<32x128xf32> to vector<32x128xbf16>
    %cst_142 = arith.constant dense<0.000000e+00> : vector<8x128xf32>
    %209 = tpu.matmul %207, %208, %cst_142 {dimension_numbers = #tpu.dot_dimension_numbers<[1], [0], [0], [1], [0, 0, 1, 1], [], []>} : vector<8x32xbf16>, vector<32x128xbf16>, vector<8x128xf32> -> vector<8x128xf32>
    %210 = arith.truncf %209 : vector<8x128xf32> to vector<8x128xbf16>
    %c0_143 = arith.constant 0 : index
    %c0_144 = arith.constant 0 : index
    %211 = vector.load %arg22[%c0_143, %c0_144] : memref<128x128xbf16, #tpu.memory_space<vmem>>, vector<128x128xbf16>
    %cst_145 = arith.constant dense<0.000000e+00> : vector<8x128xf32>
    %212 = tpu.matmul %210, %211, %cst_145 {dimension_numbers = #tpu.dot_dimension_numbers<[1], [0], [0], [1], [0, 0, 1, 1], [], []>} : vector<8x128xbf16>, vector<128x128xbf16>, vector<8x128xf32> -> vector<8x128xf32>
    %213 = arith.mulf %212, %212 : vector<8x128xf32>
    %c0_146 = arith.constant 0 : index
    %c0_147 = arith.constant 0 : index
    %214 = vector.load %arg23[%c0_146, %c0_147] : memref<8x128xf32, #tpu.memory_space<vmem>>, vector<8x128xf32>
    tpu.vector_store %arg23[%c0_146, %c0_147], %213 {strides = array<i32>} : memref<8x128xf32, #tpu.memory_space<vmem>>, vector<8x128xf32>,
    return
  }
  func.func @transform_0(%arg0: i32) -> (i32, i32) {
    %c0_i32 = arith.constant 0 : i32
    %c0_i32_0 = arith.constant 0 : i32
    %c0_i32_1 = arith.constant 0 : i32
    return %c0_i32, %c0_i32_0 : i32, i32
  }
  func.func @transform_1(%arg0: i32) -> (i32, i32) {
    %c0_i32 = arith.constant 0 : i32
    %c0_i32_0 = arith.constant 0 : i32
    %c0_i32_1 = arith.constant 0 : i32
    return %c0_i32, %c0_i32_0 : i32, i32
  }
  func.func @transform_2(%arg0: i32) -> (i32, i32) {
    %c0_i32 = arith.constant 0 : i32
    %c0_i32_0 = arith.constant 0 : i32
    %c0_i32_1 = arith.constant 0 : i32
    return %c0_i32, %c0_i32_0 : i32, i32
  }
  func.func @transform_3(%arg0: i32) -> (i32, i32) {
    %c0_i32 = arith.constant 0 : i32
    %c0_i32_0 = arith.constant 0 : i32
    %c0_i32_1 = arith.constant 0 : i32
    return %c0_i32, %c0_i32_0 : i32, i32
  }
  func.func @transform_4(%arg0: i32) -> (i32, i32) {
    %c0_i32 = arith.constant 0 : i32
    %c0_i32_0 = arith.constant 0 : i32
    %c0_i32_1 = arith.constant 0 : i32
    return %c0_i32, %c0_i32_0 : i32, i32
  }
  func.func @transform_5(%arg0: i32) -> (i32, i32) {
    %c0_i32 = arith.constant 0 : i32
    %c0_i32_0 = arith.constant 0 : i32
    %c0_i32_1 = arith.constant 0 : i32
    return %c0_i32, %c0_i32_0 : i32, i32
  }
  func.func @transform_6(%arg0: i32) -> (i32, i32) {
    %c0_i32 = arith.constant 0 : i32
    %c0_i32_0 = arith.constant 0 : i32
    %c0_i32_1 = arith.constant 0 : i32
    return %c0_i32, %c0_i32_0 : i32, i32
  }
  func.func @transform_7(%arg0: i32) -> (i32, i32) {
    %c0_i32 = arith.constant 0 : i32
    %c0_i32_0 = arith.constant 0 : i32
    %c0_i32_1 = arith.constant 0 : i32
    return %c0_i32, %c0_i32_0 : i32, i32
  }
  func.func @transform_8(%arg0: i32) -> (i32, i32) {
    %c0_i32 = arith.constant 0 : i32
    %c0_i32_0 = arith.constant 0 : i32
    %c0_i32_1 = arith.constant 0 : i32
    return %c0_i32, %c0_i32_0 : i32, i32
  }
  func.func @transform_9(%arg0: i32) -> (i32, i32) {
    %c0_i32 = arith.constant 0 : i32
    %c0_i32_0 = arith.constant 0 : i32
    %c0_i32_1 = arith.constant 0 : i32
    return %c0_i32, %c0_i32_0 : i32, i32
  }
  func.func @transform_10(%arg0: i32) -> (i32, i32) {
    %c0_i32 = arith.constant 0 : i32
    %c0_i32_0 = arith.constant 0 : i32
    %c0_i32_1 = arith.constant 0 : i32
    return %c0_i32, %c0_i32_0 : i32, i32
  }
  func.func @transform_11(%arg0: i32) -> (i32, i32) {
    %c0_i32 = arith.constant 0 : i32
    %c0_i32_0 = arith.constant 0 : i32
    %c0_i32_1 = arith.constant 0 : i32
    return %c0_i32, %c0_i32_0 : i32, i32
  }
  func.func @transform_12(%arg0: i32) -> (i32, i32) {
    %c0_i32 = arith.constant 0 : i32
    %c0_i32_0 = arith.constant 0 : i32
    %c0_i32_1 = arith.constant 0 : i32
    return %c0_i32, %c0_i32_0 : i32, i32
  }
  func.func @transform_13(%arg0: i32) -> (i32, i32) {
    %c0_i32 = arith.constant 0 : i32
    %c0_i32_0 = arith.constant 0 : i32
    %c0_i32_1 = arith.constant 0 : i32
    return %c0_i32, %c0_i32_0 : i32, i32
  }
  func.func @transform_14(%arg0: i32) -> (i32, i32) {
    %c0_i32 = arith.constant 0 : i32
    %c0_i32_0 = arith.constant 0 : i32
    %c0_i32_1 = arith.constant 0 : i32
    return %c0_i32, %c0_i32_0 : i32, i32
  }
  func.func @transform_15(%arg0: i32) -> (i32, i32) {
    %c0_i32 = arith.constant 0 : i32
    %c0_i32_0 = arith.constant 0 : i32
    %c0_i32_1 = arith.constant 0 : i32
    return %c0_i32, %c0_i32_0 : i32, i32
  }
  func.func @transform_16(%arg0: i32) -> (i32, i32, i32) {
    %c0_i32 = arith.constant 0 : i32
    %c0_i32_0 = arith.constant 0 : i32
    %c0_i32_1 = arith.constant 0 : i32
    %c0_i32_2 = arith.constant 0 : i32
    return %c0_i32, %c0_i32_0, %c0_i32_1 : i32, i32, i32
  }
  func.func @transform_17(%arg0: i32) -> (i32, i32, i32) {
    %c0_i32 = arith.constant 0 : i32
    %c0_i32_0 = arith.constant 0 : i32
    %c0_i32_1 = arith.constant 0 : i32
    %c0_i32_2 = arith.constant 0 : i32
    return %c0_i32, %c0_i32_0, %c0_i32_1 : i32, i32, i32
  }
  func.func @transform_18(%arg0: i32) -> (i32, i32, i32) {
    %c0_i32 = arith.constant 0 : i32
    %c0_i32_0 = arith.constant 0 : i32
    %c0_i32_1 = arith.constant 0 : i32
    %c0_i32_2 = arith.constant 0 : i32
    return %c0_i32, %c0_i32_0, %c0_i32_1 : i32, i32, i32
  }
  func.func @transform_19(%arg0: i32) -> (i32, i32, i32) {
    %c0_i32 = arith.constant 0 : i32
    %c0_i32_0 = arith.constant 0 : i32
    %c0_i32_1 = arith.constant 0 : i32
    %c0_i32_2 = arith.constant 0 : i32
    return %c0_i32, %c0_i32_0, %c0_i32_1 : i32, i32, i32
  }
  func.func @transform_20(%arg0: i32) -> (i32, i32) {
    %c0_i32 = arith.constant 0 : i32
    %c0_i32_0 = arith.constant 0 : i32
    %c0_i32_1 = arith.constant 0 : i32
    return %c0_i32, %c0_i32_0 : i32, i32
  }
  func.func @transform_21(%arg0: i32) -> (i32, i32) {
    %c0_i32 = arith.constant 0 : i32
    %c0_i32_0 = arith.constant 0 : i32
    %c0_i32_1 = arith.constant 0 : i32
    return %c0_i32, %c0_i32_0 : i32, i32
  }
  func.func @transform_22(%arg0: i32) -> (i32, i32) {
    %c0_i32 = arith.constant 0 : i32
    %c0_i32_0 = arith.constant 0 : i32
    %c0_i32_1 = arith.constant 0 : i32
    return %c0_i32, %c0_i32_0 : i32, i32
  }
}

</mosaic_0001>

<bundles_post_ra>
// kernel: tpu_custom_call.1
= control target key start
LH: loop header
LB: loop body
LE: loop exit
PB: predicated region body
PF: predicated region fallthrough
CT: control target
= control target key end

     0   :  { %s4070_s0 = inlined_call_operand.hbm [shape: f32[8,32], index: 0, kind: input, shape index: {}]   ;;  %s4071_s1 = inlined_call_operand.hbm [shape: f32[8,64], index: 1, kind: input, shape index: {}]   ;;  %s4072_s2 = inlined_call_operand.hbm [shape: bf16[32,64], index: 2, kind: input, shape index: {}]   ;;  %s4073_s3 = inlined_call_operand.vmem [shape: bf16[64,32], index: 3, kind: input, shape index: {}]   ;;  %s4074_s4 = inlined_call_operand.vmem [shape: bf16[32,8], index: 4, kind: input, shape index: {}]   ;;  %s4075_s5 = inlined_call_operand.vmem [shape: bf16[32,8], index: 5, kind: input, shape index: {}]   ;;  %s4076_s6 = inlined_call_operand.hbm [shape: bf16[32,128], index: 6, kind: input, shape index: {}]   ;;  %s4077_s7 = inlined_call_operand.hbm [shape: bf16[32,128], index: 7, kind: input, shape index: {}]   ;;  %s4078_s8 = inlined_call_operand.hbm [shape: bf16[32,32], index: 8, kind: input, shape index: {}]   ;;  %s4079_s9 = inlined_call_operand.hbm [shape: bf16[32,32], index: 9, kind: input, shape index: {}]   ;;  %s4080_s10 = inlined_call_operand.vmem [shape: bf16[128,128], index: 10, kind: input, shape index: {}]   ;;  %s4081_s11 = inlined_call_operand.hbm [shape: bf16[128,128], index: 11, kind: input, shape index: {}]   ;;  %s4082_s12 = inlined_call_operand.hbm [shape: bf16[32,32], index: 12, kind: input, shape index: {}]   ;;  %s4083_s13 = inlined_call_operand.hbm [shape: bf16[32,32], index: 13, kind: input, shape index: {}]   ;;  %s4084_s14 = inlined_call_operand.hbm [shape: bf16[128,128], index: 14, kind: input, shape index: {}]   ;;  %s4085_s15 = inlined_call_operand.hbm [shape: bf16[128,128], index: 15, kind: input, shape index: {}]   ;;  %s4086_s16 = inlined_call_operand.hbm [shape: f32[3,32,128], index: 16, kind: input, shape index: {}]   ;;  %s4087_s17 = inlined_call_operand.hbm [shape: f32[3,32,128], index: 17, kind: input, shape index: {}]   ;;  %s4088_s18 = inlined_call_operand.hbm [shape: f32[2,32,128], index: 18, kind: input, shape index: {}]   ;;  %s4089_s19 = inlined_call_operand.hbm [shape: f32[2,32,128], index: 19, kind: input, shape index: {}]   ;;  %s4090_s20 = inlined_call_operand.vmem [shape: bf16[8,32], index: 20, kind: input, shape index: {}]   ;;  %s4091_s21 = inlined_call_operand.hbm [shape: bf16[128,128], index: 21, kind: input, shape index: {}]   ;;  %s4092_s22 = inlined_call_operand.hbm [shape: f32[8,128], index: 22, kind: output, shape index: {}]  }
   0x1   :  { %4122 = sst [smem:[#allocation53_spill]] %s4070_s0 }
   0x2   :  { %4123 = sst [smem:[#allocation54_spill]] %s4071_s1 }
   0x3   :  { %4124 = sst [smem:[#allocation55_spill]] %s4072_s2 }
   0x4   :  { %4125 = sst [smem:[#allocation56_spill]] %s4073_s3 }
   0x5   :  { %4126 = sst [smem:[#allocation57_spill]] %s4074_s4 }
   0x6   :  { %4127 = sst [smem:[#allocation58_spill]] %s4075_s5 }
   0x7   :  { %4128 = sst [smem:[#allocation59_spill]] %s4076_s6 }
   0x8   :  { %27 = vsyncpa [#allocation3], 0 }
   0x9   :  { %28 = vsyncpa [#allocation6], 0 }
   0xa   :  { %29 = vsyncpa [#allocation9], 0 }
   0xb   :  { %30 = vsyncpa [#allocation12], 0 }
   0xc   :  { %31 = vsyncpa [#allocation15], 0 }
   0xd   :  { %32 = vsyncpa [#allocation18], 0 }
   0xe   :  { %33 = vsyncpa [#allocation21], 0 }
   0xf   :  { %34 = vsyncpa [#allocation24], 0 }
  0x10   :  { %35 = vsyncpa [#allocation27], 0  ;;  %s4129_s29 = sld [smem:[#allocation54_spill]] }
  0x16   :  { %s53_s30 = sshll.u32 %s4129_s29, 4  ;;  %s54_s30 = int_to_ptr.hbm [resolvable:$true] %s53_s30 }
  0x17   :  { %36 = vsyncpa [#allocation4], 0  ;;  %s3414_s4 = smov [#allocation5]   ;;  %s4130_s5 = sld [smem:[#allocation59_spill]] }
  0x18   :  { %s55_s0 = sshll.u32 %s3414_s4, 4  ;;  %s3415_s6 = smov [#allocation8]   ;;  %s56_s0 = int_to_ptr.vmem [resolvable:$true] %s55_s0 }
  0x19   :  { %58 = dma.hbm_to_vmem [thread:$0]  %s54_s30, 128, %s56_s0, [#allocation6]  }
  0x1a   :  { %s84_s25 = sshll.u32 %s3415_s6, 4  ;;  %s108_s27 = sshll.u32 %s4078_s8, 4  ;;  %s85_s25 = int_to_ptr.vmem [resolvable:$true] %s84_s25  ;;  %s109_s27 = int_to_ptr.hbm [resolvable:$true] %s108_s27 }
  0x1b   :  { %s3416_s3 = smov 64   ;;  %s3417_s28 = smov 4  }
  0x1c   :  { %s136_s4 = sshll.u32 %s4081_s11, 4  ;;  %s3418_s0 = smov [#allocation11]   ;;  %s137_s4 = int_to_ptr.hbm [resolvable:$true] %s136_s4 }
  0x1d   :  { %s82_s24 = sshll.u32 %s4130_s5, 4  ;;  %s110_s23 = sshll.u32 %s3418_s0, 4  ;;  %s83_s24 = int_to_ptr.hbm [resolvable:$true] %s82_s24  ;;  %s111_s23 = int_to_ptr.vmem [resolvable:$true] %s110_s23 }
  0x1e   :  { %90 = dma.hbm_to_vmem [thread:$0]  %s83_s24, 256, %s85_s25, [#allocation9], %s3416_s3, %s3416_s3, %s3417_s28  }
  0x1f   :  { %116 = dma.hbm_to_vmem [thread:$0]  %s109_s27, 256, %s111_s23, [#allocation12], %s3416_s3, %s3416_s3, %s3417_s28  }
  0x20   :  { %s3419_s8 = smov [#allocation14]   ;;  %s162_s26 = sshll.u32 %s4083_s13, 4  ;;  %s163_s26 = int_to_ptr.hbm [resolvable:$true] %s162_s26 }
  0x21   :  { %s138_s1 = sshll.u32 %s3419_s8, 4  ;;  %s188_s25 = sshll.u32 %s4085_s15, 4  ;;  %s139_s1 = int_to_ptr.vmem [resolvable:$true] %s138_s1  ;;  %s189_s25 = int_to_ptr.hbm [resolvable:$true] %s188_s25 }
  0x22   :  { %144 = dma.hbm_to_vmem [thread:$0]  %s137_s4, 1024, %s139_s1, [#allocation15], %s3416_s3, %s3416_s3, %s3417_s28  }
  0x23   :  { %s3420_s2 = smov [#allocation17]   ;;  %s3421_s27 = smov [#allocation20]  }
  0x24   :  { %s164_s29 = sshll.u32 %s3420_s2, 4  ;;  %s190_s13 = sshll.u32 %s3421_s27, 4  ;;  %s165_s29 = int_to_ptr.vmem [resolvable:$true] %s164_s29  ;;  %s191_s13 = int_to_ptr.vmem [resolvable:$true] %s190_s13 }
  0x25   :  { %170 = dma.hbm_to_vmem [thread:$0]  %s163_s26, 256, %s165_s29, [#allocation18], %s3416_s3, %s3416_s3, %s3417_s28  }
  0x26   :  { %196 = dma.hbm_to_vmem [thread:$0]  %s189_s25, 1024, %s191_s13, [#allocation21], %s3416_s3, %s3416_s3, %s3417_s28  }
  0x27   :  { %s214_s0 = sshll.u32 %s4087_s17, 4  ;;  %s3422_s15 = smov [#allocation23]   ;;  %s215_s0 = int_to_ptr.hbm [resolvable:$true] %s214_s0 }
  0x28   :  { %s216_s23 = sshll.u32 %s3422_s15, 4  ;;  %s240_s5 = sshll.u32 %s4089_s19, 4  ;;  %s217_s23 = int_to_ptr.vmem [resolvable:$true] %s216_s23  ;;  %s241_s5 = int_to_ptr.hbm [resolvable:$true] %s240_s5 }
  0x29   :  { %s3423_s6 = smov 128   ;;  %s3424_s26 = smov 8  }
  0x2a   :  { %222 = dma.hbm_to_vmem [thread:$0]  %s215_s0, 1536, %s217_s23, [#allocation24], %s3423_s6, %s3423_s6, %s3424_s26  }
  0x2b   :  { %s3425_s11 = smov [#allocation26]   ;;  %s4131_s17 = sld [smem:[#allocation53_spill]] }
  0x2c   :  { %s242_s24 = sshll.u32 %s3425_s11, 4  ;;  %s4132_s13 = sld [smem:[#allocation55_spill]]  ;;  %s243_s24 = int_to_ptr.vmem [resolvable:$true] %s242_s24 }
  0x2d   :  { %248 = dma.hbm_to_vmem [thread:$0]  %s241_s5, 1024, %s243_s24, [#allocation27], %s3423_s6, %s3423_s6, %s3424_s26  }
  0x2e   :  { %s3426_s4 = smov [#allocation2]   ;;  %s3427_s0 = smov [#allocation7]  }
  0x2f   :  { %s44_s15 = sshll.u32 %s3426_s4, 4  ;;  %s65_s23 = sshll.u32 %s3427_s0, 4  ;;  %s45_s15 = int_to_ptr.vmem [resolvable:$true] %s44_s15  ;;  %s66_s23 = int_to_ptr.vmem [resolvable:$true] %s65_s23 }
  0x30   :  { %s95_s11 = sshll.u32 %s4077_s7, 4  ;;  %s121_s25 = sshll.u32 %s4079_s9, 4  ;;  %s96_s11 = int_to_ptr.hbm [resolvable:$true] %s95_s11  ;;  %s122_s25 = int_to_ptr.hbm [resolvable:$true] %s121_s25 }
  0x31   :  { %s42_s29 = sshll.u32 %s4131_s17, 4  ;;  %s3428_s2 = smov [#allocation10]   ;;  %s43_s29 = int_to_ptr.hbm [resolvable:$true] %s42_s29 }
  0x32   :  { %s63_s30 = sshll.u32 %s4132_s13, 4  ;;  %s97_s17 = sshll.u32 %s3428_s2, 4  ;;  %s64_s30 = int_to_ptr.hbm [resolvable:$true] %s63_s30  ;;  %s98_s17 = int_to_ptr.vmem [resolvable:$true] %s97_s17 }
  0x33   :  { %47 = dma.hbm_to_vmem [thread:$0]  %s43_s29, 128, %s45_s15, [#allocation3]  }
  0x34   :  { %71 = dma.hbm_to_vmem [thread:$0]  %s64_s30, 256, %s66_s23, [#allocation6], %s3416_s3, %s3416_s3, %s3417_s28  }
  0x35   :  { %103 = dma.hbm_to_vmem [thread:$0]  %s96_s11, 256, %s98_s17, [#allocation9], %s3416_s3, %s3416_s3, %s3417_s28  }
  0x36   :  { %s3429_s29 = smov [#allocation13]   ;;  %s149_s13 = sshll.u32 %s4082_s12, 4  ;;  %s150_s13 = int_to_ptr.hbm [resolvable:$true] %s149_s13 }
  0x37   :  { %s123_s7 = sshll.u32 %s3429_s29, 4  ;;  %s175_s4 = sshll.u32 %s4084_s14, 4  ;;  %s124_s7 = int_to_ptr.vmem [resolvable:$true] %s123_s7  ;;  %s176_s4 = int_to_ptr.hbm [resolvable:$true] %s175_s4 }
  0x38   :  { %129 = dma.hbm_to_vmem [thread:$0]  %s122_s25, 256, %s124_s7, [#allocation12], %s3416_s3, %s3416_s3, %s3417_s28  }
  0x39   :  { %s3430_s15 = smov [#allocation16]   ;;  %s3431_s23 = smov [#allocation19]  }
  0x3a   :  { %s151_s0 = sshll.u32 %s3430_s15, 4  ;;  %s177_s12 = sshll.u32 %s3431_s23, 4  ;;  %s152_s0 = int_to_ptr.vmem [resolvable:$true] %s151_s0  ;;  %s178_s12 = int_to_ptr.vmem [resolvable:$true] %s177_s12 }
  0x3b   :  { %157 = dma.hbm_to_vmem [thread:$0]  %s150_s13, 256, %s152_s0, [#allocation15], %s3416_s3, %s3416_s3, %s3417_s28  }
  0x3c   :  { %s201_s11 = sshll.u32 %s4086_s16, 4  ;;  %s227_s24 = sshll.u32 %s4088_s18, 4  ;;  %s202_s11 = int_to_ptr.hbm [resolvable:$true] %s201_s11  ;;  %s228_s24 = int_to_ptr.hbm [resolvable:$true] %s227_s24 }
  0x3d   :  { %183 = dma.hbm_to_vmem [thread:$0]  %s176_s4, 1024, %s178_s12, [#allocation18], %s3416_s3, %s3416_s3, %s3417_s28  }
  0x3e   :  { %s3432_s25 = smov [#allocation22]   ;;  %s3433_s17 = smov [#allocation25]  }
  0x3f   :  { %s203_s2 = sshll.u32 %s3432_s25, 4  ;;  %s229_s16 = sshll.u32 %s3433_s17, 4  ;;  %s204_s2 = int_to_ptr.vmem [resolvable:$true] %s203_s2  ;;  %s230_s16 = int_to_ptr.vmem [resolvable:$true] %s229_s16 }
  0x40   :  { %209 = dma.hbm_to_vmem [thread:$0]  %s202_s11, 1536, %s204_s2, [#allocation21], %s3423_s6, %s3423_s6, %s3424_s26  }
  0x41   :  { %s255_s19 = sshll.u32 %s4091_s21, 4  ;;  %s3434_s18 = smov [#allocation28]   ;;  %s256_s19 = int_to_ptr.hbm [resolvable:$true] %s255_s19 }
  0x42   :  { %235 = dma.hbm_to_vmem [thread:$0]  %s228_s24, 1024, %s230_s16, [#allocation24], %s3423_s6, %s3423_s6, %s3424_s26  }
  0x43   :  { %s257_s27 = sshll.u32 %s3434_s18, 4  ;;  %s258_s27 = int_to_ptr.vmem [resolvable:$true] %s257_s27 }
  0x44   :  { %263 = dma.hbm_to_vmem [thread:$0]  %s256_s19, 1024, %s258_s27, [#allocation27], %s3416_s3, %s3416_s3, %s3417_s28  }
  0x45   :  { %3394 = dma.done.wait [#allocation3], 128  }
  0x46   :  { %3395 = vsyncadd [#allocation3], 4294967168 }
  0x47   :  { %3396 = dma.done.wait [#allocation6], 384  }
  0x48   :  { %3397 = vsyncadd [#allocation6], 4294966912 }
  0x49   :  { %3398 = dma.done.wait [#allocation9], 512  }
  0x4a   :  { %3399 = vsyncadd [#allocation9], 4294966784 }
  0x4b   :  { %3400 = dma.done.wait [#allocation12], 512  }
  0x4c   :  { %3401 = vsyncadd [#allocation12], 4294966784 }
  0x4d   :  { %3402 = dma.done.wait [#allocation15], 1280  }
  0x4e   :  { %3403 = vsyncadd [#allocation15], 4294966016 }
  0x4f   :  { %3404 = dma.done.wait [#allocation18], 1280  }
  0x50   :  { %3405 = vsyncadd [#allocation18], 4294966016 }
  0x51   :  { %3406 = dma.done.wait [#allocation21], 2560  }
  0x52   :  { %3407 = vsyncadd [#allocation21], 4294964736 }
  0x53   :  { %3408 = dma.done.wait [#allocation24], 2560  }
  0x54   :  { %3409 = vsyncadd [#allocation24], 4294964736 }
  0x55   :  { %3410 = dma.done.wait [#allocation27], 2048  }
  0x56   :  { %3411 = vsyncadd [#allocation27], 4294965248  ;;  %v2840_v0 = vld [vmem:[#allocation7 + $0x8] sm:$0xff]  ;;  %v2839_v1 = vld [vmem:[#allocation7] sm:$0xff]  ;;  %vm352_vm0 = vcmask 261120   ;;  %s4133_s28 = sld [smem:[#allocation56_spill]] }
  0x57   :  { %362 = vmatpush.bf16.msra.mxu0 %v2840_v0  ;;  %v333_v2 = vld [vmem:[#allocation2] sm:$0xff]  ;;  %v339_v8 = vld [vmem:[#allocation5] sm:$0xff]  ;;  %vm411_vm1 = vcmask 523264   ;;  %v3435_v40 = vmov 2102212464   ;;  %s4134_s23 = sld [smem:[#allocation57_spill]] }
  0x58   :  { %v334_v3 = vpack.c.bf16 %v333_v2, %v333_v2  ;;  %v3436_v42 = vmov 920167782   ;;  %v3437_v45 = vmov 1326507024   ;;  %v3438_v47 = vmov 683565275  }
  0x59   :  { %v3439_v49 = vmov 2475754826   ;;  %v3440_v52 = vmov 2131351028   ;;  %s4135_s1 = sld [smem:[#allocation58_spill]]  ;;  %s3442_s4 = smov [#allocation29]  }
  0x5a   :  { %s2506_s15 = sshll.u32 %s3442_s4, 4  ;;  %s2508_s12 = sshll.u32 %s4092_s22, 4  ;;  %s2507_s15 = int_to_ptr.vmem [resolvable:$true] %s2506_s15  ;;  %s2509_s12 = int_to_ptr.hbm [resolvable:$true] %s2508_s12 }
  0x5b   :  { %363 = vmatpush.bf16.msra.mxu0 %v2839_v1 }
  0x5c   :  { %v2844_v4 = vld [vmem:[%s4133_s28 + $0x18] sm:$0xff]  ;;  %v2843_v5 = vld [vmem:[%s4133_s28 + $0x10] sm:$0xff]  ;;  %v2842_v6 = vld [vmem:[%s4133_s28 + $0x8] sm:$0xff] }
  0x5d   :  { %419 = vmatpush.bf16.msra.mxu1 %v2844_v4  ;;  %v2841_v7 = vld [vmem:[%s4133_s28] sm:$0xff] }
  0x5e   :  { %2534 = vmatmul.msk.bf16.vlgmr.msra.gmra.mxu0 %vm352_vm0, %v334_v3 }
  0x61   :  { %420 = vmatpush.bf16.msra.mxu1 %v2843_v5 }
  0x65   :  { %421 = vmatpush.bf16.msra.mxu1 %v2842_v6 }
  0x69   :  { %422 = vmatpush.bf16.msra.mxu1 %v2841_v7 }
  0xdb   :  { %v365_v9 = vpop.f32.mrf.mxu0 }
  0xdc   :  { %v366_v10 = vadd.f32 %v365_v9, %v339_v8 }
  0xde   :  { %v369_v11 = vmul.f32 %v366_v10, %v366_v10 }
  0xe0   :  { %v370_v12 = vmul.f32 %v369_v11, %v366_v10 }
  0xe2   :  { %v371_v13 = vmul.f32 0.044715, %v370_v12 }
  0xe3   :  { %v367_v14 = vpop.f32.mrf.mxu0 }
  0xe4   :  { %v372_v15 = vadd.f32 %v371_v13, %v366_v10 }
  0xe6   :  { %v373_v16 = vmul.f32 0.7978846, %v372_v15 }
  0xe8   :  { %2930 = vtanh.f32 %v373_v16 }
  0xee   :  { %v2931_v17 = vpop.eup %2930 }
  0xef   :  { %v375_v18 = vadd.f32 1.0, %v2931_v17 }
  0xf1   :  { %v376_v19 = vmul.f32 0.5, %v375_v18 }
  0xf3   :  { %v377_v20 = vmul.f32 %v376_v19, %v366_v10 }
  0xf5   :  { %v378_v21 = vpack.c.bf16 %v377_v20, %v377_v20 }
  0xf7   :  { %2551 = vmatmul.msk.bf16.vlgmr.msra.gmra.mxu1 %vm411_vm1, %v378_v21 }
 0x174   :  { %v424_v22 = vpop.f32.mrf.mxu1 }
 0x175   :  { %2932 = vtanh.f32 %v424_v22 }
 0x17b   :  { %v2933_v23 = vpop.eup %2932 }
 0x17c   :  { %v429_v24 = vmul.f32 3.1415927, %v2933_v23  ;;  %v426_v25 = vpop.f32.mrf.mxu1 }
 0x17e   :  { %v430_v26 = vadd.f32 3.1415927, %v429_v24 }
 0x180   :  { %v431_v27 = vmax.f32 %v430_v26, 0.0  ;;  %v3441_v26 = vmov 0  }
 0x182   :  { %v3667_v28 = vmin.f32 %v431_v27, 6.2831855 }
 0x184   :  { %v436_v29 = vand.u32 2139095040, %v3667_v28  ;;  %v433_v32 = vand.u32 2147483647, %v3667_v28  ;;  %vm435_vm14 = vcmp.lt.s32.totalorder %v3667_v28, 0 }
 0x186   :  { %v437_v30 = vshrl.u32 %v436_v29, 23  ;;  %v440_v34 = vand.u32 8388607, %v433_v32  ;;  %vm434_vm15 = vcmp.le.f32.partialorder %v433_v32, 0.7853982 }
 0x188   :  { %v2552_v31 = vadd.s32 4294967169, %v437_v30  ;;  %v441_v38 = vor.u32 8388608, %v440_v34 }
 0x18a   :  { %v443_v33 = vadd.s32 1, %v2552_v31  ;;  %v3682_v59 = vshll.u32 %v441_v38, 8 }
 0x18c   :  { %vm444_vm2 = vcmp.gt.s32.totalorder %v443_v33, 0  ;;  %v482_v5 = vand.u32 65535, %v3682_v59  ;;  %v483_v7 = vshrl.u32 %v3682_v59, 16 }
 0x18d   :  { %v445_v35 = vsel %vm444_vm2, %v443_v33, 0 }
 0x18e   :  { %v447_v36 = vand.u32 31, %v445_v35  ;;  %v3675_v39 = vshrl.u32 %v445_v35, 5 }
 0x190   :  { %v3673_v37 = vsub.s32 32, %v447_v36  ;;  %v459_v41 = vshll.u32 %v3435_v40, %v447_v36  ;;  %v462_v43 = vshll.u32 %v3436_v42, %v447_v36  ;;  %v450_v48 = vshll.u32 %v3438_v47, %v447_v36 }
 0x191   :  { %v453_v51 = vshll.u32 %v3439_v49, %v447_v36  ;;  %v456_v54 = vshll.u32 %v3440_v52, %v447_v36  ;;  %vm468_vm3 = vcmp.lt.s32.totalorder %v3675_v39, 4  ;;  %vm465_vm4 = vcmp.lt.s32.totalorder %v3675_v39, 1 }
 0x192   :  { %v460_v44 = vshrl.u32 %v3436_v42, %v3673_v37  ;;  %v463_v46 = vshrl.u32 %v3437_v45, %v3673_v37  ;;  %v451_v50 = vshrl.u32 %v3439_v49, %v3673_v37  ;;  %v454_v53 = vshrl.u32 %v3440_v52, %v3673_v37 }
 0x193   :  { %v457_v55 = vshrl.u32 %v3435_v40, %v3673_v37  ;;  %vm467_vm5 = vcmp.lt.s32.totalorder %v3675_v39, 3  ;;  %vm466_vm6 = vcmp.lt.s32.totalorder %v3675_v39, 2  ;;  %v449_v33 = vshrl.u32 %v3438_v47, %v3673_v37 }
 0x194   :  { %v461_v56 = vor.u32 %v460_v44, %v459_v41  ;;  %v464_v57 = vor.u32 %v463_v46, %v462_v43  ;;  %v452_v58 = vor.u32 %v451_v50, %v450_v48  ;;  %v455_v60 = vor.u32 %v454_v53, %v453_v51 }
 0x195   :  { %v458_v61 = vor.u32 %v457_v55, %v456_v54 }
 0x196   :  { %v474_v62 = vsel %vm468_vm3, %v461_v56, 920167782  ;;  %v478_v63 = vsel %vm468_vm3, %v464_v57, 1326507024  ;;  %v473_v0 = vsel %vm465_vm4, %v452_v58, %v455_v60  ;;  %v469_v41 = vsel %vm465_vm4, %v449_v33, %v452_v58 }
 0x197   :  { %v475_v1 = vsel %vm467_vm5, %v458_v61, %v474_v62  ;;  %v477_v2 = vsel %vm465_vm4, %v455_v60, %v458_v61  ;;  %v479_v4 = vsel %vm467_vm5, %v461_v56, %v478_v63  ;;  %v470_v29 = vsel %vm468_vm3, %v458_v61, 2102212464 }
 0x198   :  { %v476_v3 = vsel %vm466_vm6, %v473_v0, %v475_v1  ;;  %v480_v6 = vsel %vm466_vm6, %v477_v2, %v479_v4  ;;  %v471_v42 = vsel %vm467_vm5, %v455_v60, %v470_v29 }
 0x199   :  { %v506_v8 = vand.u32 65535, %v476_v3  ;;  %v507_v9 = vshrl.u32 %v476_v3, 16  ;;  %v484_v10 = vand.u32 65535, %v480_v6  ;;  %v485_v11 = vshrl.u32 %v480_v6, 16 }
 0x19a   :  { %v472_v37 = vsel %vm466_vm6, %v469_v41, %v471_v42 }
 0x19b   :  { %v509_v12 = vmul.u32 %v507_v9, %v482_v5  ;;  %v510_v13 = vmul.u32 %v506_v8, %v483_v7  ;;  %v487_v14 = vmul.u32 %v485_v11, %v482_v5  ;;  %v488_v15 = vmul.u32 %v484_v10, %v483_v7 }
 0x19c   :  { %v508_v16 = vmul.u32 %v506_v8, %v482_v5  ;;  %v486_v18 = vmul.u32 %v484_v10, %v482_v5  ;;  %v511_v20 = vmul.u32 %v507_v9, %v483_v7  ;;  %v489_v21 = vmul.u32 %v485_v11, %v483_v7 }
 0x19d   :  { %v512_v17 = vshll.u32 %v509_v12, 16  ;;  %v490_v19 = vshll.u32 %v487_v14, 16  ;;  %v514_v22 = vshll.u32 %v510_v13, 16  ;;  %v492_v24 = vshll.u32 %v488_v15, 16 }
 0x19e   :  { %v513_v38 = vshrl.u32 %v509_v12, 16  ;;  %v491_v43 = vshrl.u32 %v487_v14, 16  ;;  %v515_v45 = vshrl.u32 %v510_v13, 16  ;;  %v493_v48 = vshrl.u32 %v488_v15, 16 }
 0x19f   :  { %vm516_vm7 = vc.u32 %v508_v16, %v512_v17  ;;  %v518_v23 = vadd.s32 %v512_v17, %v508_v16  ;;  %vm494_vm8 = vc.u32 %v486_v18, %v490_v19  ;;  %v496_v25 = vadd.s32 %v490_v19, %v486_v18 }
 0x1a0   :  { %v517_v27 = vsel %vm516_vm7, 1, %v3441_v26  ;;  %v495_v30 = vsel %vm494_vm8, 1, %v3441_v26  ;;  %v526_v53 = vmul.u32 %v3682_v59, %v472_v37  ;;  %vm576_vm7 = vweird.f32 %v3667_v28 }
 0x1a1   :  { %v519_v31 = vadd.s32 %v517_v27, %v511_v20  ;;  %vm520_vm9 = vc.u32 %v518_v23, %v514_v22  ;;  %v497_v34 = vadd.s32 %v495_v30, %v489_v21  ;;  %vm498_vm10 = vc.u32 %v496_v25, %v492_v24 }
 0x1a2   :  { %v521_v35 = vsel %vm520_vm9, 1, %v3441_v26  ;;  %v499_v36 = vsel %vm498_vm10, 1, %v3441_v26  ;;  %v522_v51 = vadd.s32 %v518_v23, %v514_v22  ;;  %vm769_vm8 = vcmask 1043456  }
 0x1a3   :  { %v523_v40 = vadd.s32 %v521_v35, %v519_v31  ;;  %v501_v44 = vadd.s32 %v499_v36, %v497_v34  ;;  %vm762_vm9 = vcmask 64512  }
 0x1a5   :  { %v524_v46 = vadd.s32 %v523_v40, %v513_v38  ;;  %v502_v49 = vadd.s32 %v501_v44, %v491_v43 }
 0x1a7   :  { %v525_v47 = vadd.s32 %v524_v46, %v515_v45  ;;  %v503_v50 = vadd.s32 %v502_v49, %v493_v48 }
 0x1a9   :  { %v529_v52 = vadd.s32 1, %v525_v47  ;;  %vm528_vm11 = vc.u32 %v503_v50, %v522_v51  ;;  %v527_v1 = vadd.s32 %v522_v51, %v503_v50  ;;  %v2845_v51 = vld [vmem:[%s4134_s23] sm:$0xff] }
 0x1ab   :  { %v530_v54 = vsel %vm528_vm11, %v529_v52, %v525_v47  ;;  %v2847_v52 = vld [vmem:[%s4135_s1] sm:$0xff] }
 0x1ac   :  { %v531_v55 = vadd.s32 %v530_v54, %v526_v53  ;;  %v2848_v53 = vld [vmem:[%s4135_s1 + $0x8] sm:$0xff]  ;;  %v2852_v54 = vld [vmem:[#allocation10 + $0x8] sm:$0xff] }
 0x1ae   :  { %v532_v56 = vadd.s32 536870912, %v531_v55 }
 0x1b0   :  { %v533_v57 = vshrl.u32 %v532_v56, 30  ;;  %v2851_v56 = vld [vmem:[#allocation10] sm:$0xff] }
 0x1b2   :  { %v534_v58 = vshll.u32 %v533_v57, 30  ;;  %v557_v14 = vsub.s32 4, %v533_v57 }
 0x1b4   :  { %v535_v60 = vsub.s32 %v531_v55, %v534_v58  ;;  %v558_v19 = vsel %vm435_vm14, %v557_v14, %v533_v57  ;;  %v2850_v55 = vld [vmem:[#allocation8 + $0x8] sm:$0xff]  ;;  %v2849_v57 = vld [vmem:[#allocation8] sm:$0xff] }
 0x1b5   :  { %v560_v22 = vsel %vm434_vm15, 0, %v558_v19 }
 0x1b6   :  { %vm536_vm12 = vcmp.lt.s32.totalorder %v535_v60, 0  ;;  %v537_v61 = vsub.s32 0, %v535_v60  ;;  %v731_v27 = vadd.s32 3, %v560_v22  ;;  %v577_v33 = vand.u32 3, %v560_v22 }
 0x1b8   :  { %v538_v62 = vsel %vm536_vm12, %v537_v61, %v535_v60  ;;  %v732_v34 = vand.u32 3, %v731_v27  ;;  %vm578_vm1 = vcmp.lt.s32.totalorder %v577_v33, 2  ;;  %vm579_vm2 = vcmp.eq.s32.totalorder %v577_v33, 0 }
 0x1b9   :  { %v539_v63 = vclz %v538_v62  ;;  %vm582_vm3 = vcmp.eq.s32.totalorder %v577_v33, 2 }
 0x1ba   :  { %vm733_vm4 = vcmp.lt.s32.totalorder %v732_v34, 2  ;;  %vm734_vm5 = vcmp.eq.s32.totalorder %v732_v34, 0  ;;  %vm737_vm6 = vcmp.eq.s32.totalorder %v732_v34, 2 }
 0x1bb   :  { %v2553_v0 = vadd.s32 4294967294, %v539_v63 }
 0x1bd   :  { %vm2554_vm13 = vcmp.lt.s32.totalorder %v2553_v0, 0 }
 0x1be   :  { %v542_v39 = vsel %vm2554_vm13, 0, %v2553_v0 }
 0x1bf   :  { %v543_v2 = vsub.s32 32, %v542_v39  ;;  %v547_v3 = vsub.s32 4294967266, %v542_v39  ;;  %v544_v4 = vshll.u32 %v535_v60, %v542_v39 }
 0x1c1   :  { %v545_v5 = vshrl.u32 %v527_v1, %v543_v2  ;;  %v548_v59 = vadd.s32 127, %v547_v3 }
 0x1c3   :  { %v546_v6 = vor.u32 %v545_v5, %v544_v4  ;;  %v549_v7 = vshll.u32 %v548_v59, 23 }
 0x1c5   :  { %v550_v8 = vor.u32 4788187, %v549_v7  ;;  %v553_v10 = vcvt.s32.f32 %v546_v6 }
 0x1c7   :  { %v551_v9 = vand.u32 2147483647, %v550_v8 }
 0x1c9   :  { %v554_v11 = vmul.f32 %v553_v10, %v551_v9 }
 0x1cb   :  { %v555_v12 = vxor.u32 2147483648, %v554_v11 }
 0x1cd   :  { %v556_v13 = vsel %vm435_vm14, %v555_v12, %v554_v11 }
 0x1ce   :  { %v559_v15 = vsel %vm434_vm15, %v3667_v28, %v556_v13  ;;  %v2846_v28 = vld [vmem:[%s4134_s23 + $0x8] sm:$0xff] }
 0x1cf   :  { %v561_v16 = vmul.f32 %v559_v15, %v559_v15 }
 0x1d1   :  { %v562_v17 = vmul.f32 -0.001358992, %v561_v16  ;;  %v569_v18 = vmul.f32 -0.00019511016, %v561_v16 }
 0x1d3   :  { %v563_v20 = vadd.f32 0.041655596, %v562_v17  ;;  %v570_v21 = vadd.f32 0.008332121, %v569_v18 }
 0x1d5   :  { %v564_v23 = vmul.f32 %v563_v20, %v561_v16  ;;  %v571_v24 = vmul.f32 %v570_v21, %v561_v16 }
 0x1d7   :  { %v565_v25 = vadd.f32 -0.4999988, %v564_v23  ;;  %v572_v26 = vadd.f32 -0.16666654, %v571_v24 }
 0x1d9   :  { %v566_v29 = vmul.f32 %v565_v25, %v561_v16  ;;  %v573_v30 = vmul.f32 %v572_v26, %v561_v16 }
 0x1db   :  { %v567_v31 = vadd.f32 1.0, %v566_v29  ;;  %v574_v32 = vadd.f32 1.0, %v573_v30 }
 0x1dd   :  { %v575_v35 = vmul.f32 %v574_v32, %v559_v15  ;;  %v583_v36 = vxor.u32 2147483648, %v567_v31 }
 0x1df   :  { %v580_v38 = vxor.u32 2147483648, %v575_v35  ;;  %v584_v41 = vsel %vm582_vm3, %v583_v36, %v575_v35  ;;  %v739_v43 = vsel %vm737_vm6, %v583_v36, %v575_v35 }
 0x1e1   :  { %v581_v40 = vsel %vm579_vm2, %v567_v31, %v580_v38  ;;  %v736_v42 = vsel %vm734_vm5, %v567_v31, %v580_v38 }
 0x1e2   :  { %v585_v44 = vsel %vm578_vm1, %v581_v40, %v584_v41  ;;  %v740_v45 = vsel %vm733_vm4, %v736_v42, %v739_v43  ;;  %v1002_v41 = vld [vmem:[#allocation22 + $0x10] sm:$0xff] }
 0x1e3   :  { %v586_v46 = vsel %vm576_vm7, nan, %v585_v44  ;;  %v741_v48 = vsel %vm576_vm7, nan, %v740_v45  ;;  %v1006_v42 = vld [vmem:[#allocation23 + $0x10] sm:$0xff] }
 0x1e4   :  { %v750_v49 = vpack.c.bf16 %v586_v46, %v586_v46  ;;  %v751_v37 = vpack.c.bf16 %v741_v48, %v741_v48  ;;  %v1003_v48 = vld [vmem:[#allocation22 + $0x18] sm:$0xff] }
 0x1e6   :  { %v771_v47 = vsel %vm769_vm8, %v750_v49, 0  ;;  %v809_v50 = vsel %vm769_vm8, %v751_v37, 0  ;;  %v1007_v49 = vld [vmem:[#allocation23 + $0x18] sm:$0xff] }
 0x1e7   :  { %780 = vmatpush.bf16.msra.mxu2 %v771_v47  ;;  %818 = vmatpush.bf16.msra.mxu3 %v809_v50 }
 0x1e8   :  { %837 = vmatpush.bf16.msrb.mxu0 %v771_v47  ;;  %860 = vmatpush.bf16.msrb.mxu1 %v809_v50  ;;  %v1001_v50 = vld [vmem:[#allocation22 + $0x8] sm:$0xff] }
 0x1ea   :  { %2566 = vmatmul.msk.bf16.vlgmr.msra.gmra.mxu2 %vm762_vm9, %v2845_v51  ;;  %2576 = vmatmul.msk.bf16.vlgmr.msra.gmra.mxu3 %vm762_vm9, %v2847_v52 }
 0x1eb   :  { %2578 = vmatmul.msk.bf16.vlgmr.msrb.gmra.mxu0 %vm762_vm9, %v2847_v52  ;;  %2580 = vmatmul.msk.bf16.vlgmr.msrb.gmra.mxu1 %vm762_vm9, %v2845_v51  ;;  %v1005_v51 = vld [vmem:[#allocation23 + $0x8] sm:$0xff] }
 0x1ec   :  { %945 = vmatpush.bf16.msrb.mxu3 %v2852_v54  ;;  %964 = vmatpush.bf16.msra.mxu0 %v2850_v55 }
 0x1ed   :  { %908 = vmatpush.bf16.msrb.mxu2 %v2850_v55  ;;  %987 = vmatpush.bf16.msra.mxu1 %v2852_v54 }
 0x1f0   :  { %946 = vmatpush.bf16.msrb.mxu3 %v2851_v56  ;;  %965 = vmatpush.bf16.msra.mxu0 %v2849_v57 }
 0x1f1   :  { %909 = vmatpush.bf16.msrb.mxu2 %v2849_v57  ;;  %988 = vmatpush.bf16.msra.mxu1 %v2851_v56 }
 0x1fa   :  { %2567 = vmatmul.msk.bf16.gmra.mxu2 %vm762_vm9, %v2846_v28  ;;  %2577 = vmatmul.msk.bf16.gmra.mxu3 %vm762_vm9, %v2848_v53 }
 0x1fb   :  { %2579 = vmatmul.msk.bf16.gmra.mxu0 %vm762_vm9, %v2848_v53  ;;  %2581 = vmatmul.msk.bf16.gmra.mxu1 %vm762_vm9, %v2846_v28 }
 0x268   :  { %v839_v58 = vpop.f32.mrf.mxu0  ;;  %v862_v60 = vpop.f32.mrf.mxu1 }
 0x269   :  { %v863_v39 = vadd.f32 %v862_v60, %v839_v58  ;;  %v1000_v58 = vld [vmem:[#allocation22] sm:$0xff] }
 0x26a   :  { %v1004_v60 = vld [vmem:[#allocation23] sm:$0xff] }
 0x26d   :  { %v782_v61 = vpop.f32.mrf.mxu2  ;;  %v820_v62 = vpop.f32.mrf.mxu3 }
 0x26e   :  { %v849_v5 = vsub.f32 %v782_v61, %v820_v62 }
 0x270   :  { %v841_v63 = vpop.f32.mrf.mxu0  ;;  %v864_v0 = vpop.f32.mrf.mxu1 }
 0x271   :  { %v865_v1 = vadd.f32 %v864_v0, %v841_v63 }
 0x273   :  { %v882_v2 = vpack.c.bf16 %v865_v1, %v863_v39 }
 0x275   :  { %2600 = vmatmul.msk.bf16.vlgmr.msrb.gmra.mxu3 %vm352_vm0, %v882_v2  ;;  %2602 = vmatmul.msk.bf16.vlgmr.msra.gmra.mxu0 %vm352_vm0, %v882_v2  ;;  %v784_v3 = vpop.f32.mrf.mxu2  ;;  %v822_v4 = vpop.f32.mrf.mxu3 }
 0x276   :  { %v850_v59 = vsub.f32 %v784_v3, %v822_v4 }
 0x278   :  { %v880_v6 = vpack.c.bf16 %v850_v59, %v849_v5  ;;  %v844_v7 = vpop.f32.mrf.mxu0  ;;  %v867_v8 = vpop.f32.mrf.mxu1 }
 0x279   :  { %v868_v13 = vadd.f32 %v867_v8, %v844_v7 }
 0x27a   :  { %2590 = vmatmul.msk.bf16.vlgmr.msrb.gmra.mxu2 %vm352_vm0, %v880_v6  ;;  %2604 = vmatmul.msk.bf16.vlgmr.msra.gmra.mxu1 %vm352_vm0, %v880_v6 }
 0x27d   :  { %v787_v9 = vpop.f32.mrf.mxu2  ;;  %v825_v10 = vpop.f32.mrf.mxu3 }
 0x27e   :  { %v851_v18 = vsub.f32 %v787_v9, %v825_v10 }
 0x280   :  { %v846_v11 = vpop.f32.mrf.mxu0  ;;  %v869_v12 = vpop.f32.mrf.mxu1 }
 0x281   :  { %v870_v14 = vadd.f32 %v869_v12, %v846_v11 }
 0x283   :  { %v883_v15 = vpack.c.bf16 %v870_v14, %v868_v13 }
 0x285   :  { %2601 = vmatmul.msk.bf16.gmra.mxu3 %vm352_vm0, %v883_v15  ;;  %2603 = vmatmul.msk.bf16.gmra.mxu0 %vm352_vm0, %v883_v15  ;;  %v789_v16 = vpop.f32.mrf.mxu2  ;;  %v827_v17 = vpop.f32.mrf.mxu3 }
 0x286   :  { %v852_v19 = vsub.f32 %v789_v16, %v827_v17  ;;  %v3741_v17 = vld [vmem:[#allocation20 + $0x38] sm:$0xff] }
 0x288   :  { %v881_v20 = vpack.c.bf16 %v852_v19, %v851_v18  ;;  %v3743_v18 = vld [vmem:[#allocation19 + $0x38] sm:$0xff]  ;;  %v3745_v19 = vld [vmem:[#allocation16] sm:$0xff] }
 0x28a   :  { %2591 = vmatmul.msk.bf16.gmra.mxu2 %vm352_vm0, %v881_v20  ;;  %2605 = vmatmul.msk.bf16.gmra.mxu1 %vm352_vm0, %v881_v20  ;;  %v3747_v20 = vld [vmem:[#allocation17] sm:$0xff] }
 0x2f2   :  { %v967_v21 = vpop.f32.mrf.mxu0 }
 0x2f7   :  { %v990_v22 = vpop.f32.mrf.mxu1 }
 0x2f8   :  { %v948_v23 = vpop.f32.mrf.mxu3  ;;  %v991_v47 = vadd.f32 %v990_v22, %v967_v21  ;;  %v3751_v21 = vld [vmem:[#allocation20 + $0x30] sm:$0xff] }
 0x2f9   :  { %v3753_v22 = vld [vmem:[#allocation19 + $0x30] sm:$0xff] }
 0x2fa   :  { %v969_v25 = vpop.f32.mrf.mxu0  ;;  %v1012_v7 = vmul.f32 %v1004_v60, %v991_v47  ;;  %v1024_v8 = vmul.f32 %v1000_v58, %v991_v47 }
 0x2fd   :  { %v911_v24 = vpop.f32.mrf.mxu2 }
 0x2fe   :  { %v977_v44 = vsub.f32 %v911_v24, %v948_v23  ;;  %v3767_v23 = vld [vmem:[#allocation20 + $0x28] sm:$0xff] }
 0x2ff   :  { %v992_v26 = vpop.f32.mrf.mxu1  ;;  %v3769_v24 = vld [vmem:[#allocation19 + $0x28] sm:$0xff] }
 0x300   :  { %v950_v27 = vpop.f32.mrf.mxu3  ;;  %v993_v45 = vadd.f32 %v992_v26, %v969_v25  ;;  %v1008_v39 = vmul.f32 %v1000_v58, %v977_v44  ;;  %v1020_v1 = vmul.f32 %v1004_v60, %v977_v44  ;;  %v3775_v25 = vld [vmem:[#allocation20 + $0x20] sm:$0xff] }
 0x301   :  { %v3777_v26 = vld [vmem:[#allocation19 + $0x20] sm:$0xff] }
 0x302   :  { %v972_v31 = vpop.f32.mrf.mxu0  ;;  %v1013_v2 = vmul.f32 %v1005_v51, %v993_v45  ;;  %v1025_v3 = vmul.f32 %v1001_v50, %v993_v45  ;;  %v1016_v13 = vsub.f32 %v1008_v39, %v1012_v7  ;;  %v1028_v14 = vadd.f32 %v1024_v8, %v1020_v1 }
 0x305   :  { %v913_v29 = vpop.f32.mrf.mxu2 }
 0x306   :  { %v978_v36 = vsub.f32 %v913_v29, %v950_v27  ;;  %v3783_v27 = vld [vmem:[#allocation20 + $0x18] sm:$0xff] }
 0x307   :  { %v995_v30 = vpop.f32.mrf.mxu1  ;;  %v3785_v29 = vld [vmem:[#allocation19 + $0x18] sm:$0xff] }
 0x308   :  { %v953_v32 = vpop.f32.mrf.mxu3  ;;  %v996_v38 = vadd.f32 %v995_v30, %v972_v31  ;;  %v1009_v54 = vmul.f32 %v1001_v50, %v978_v36  ;;  %v1021_v55 = vmul.f32 %v1005_v51, %v978_v36  ;;  %v3787_v30 = vld [vmem:[#allocation16 + $0x8] sm:$0xff]  ;;  %v3789_v31 = vld [vmem:[#allocation17 + $0x8] sm:$0xff]  ;;  %v3821_v36 = vld [vmem:[#allocation20] sm:$0xff] }
 0x30a   :  { %v974_v40 = vpop.f32.mrf.mxu0  ;;  %v1014_v56 = vmul.f32 %v1006_v42, %v996_v38  ;;  %v1026_v57 = vmul.f32 %v1002_v41, %v996_v38  ;;  %v1017_v9 = vsub.f32 %v1009_v54, %v1013_v2  ;;  %v1029_v10 = vadd.f32 %v1025_v3, %v1021_v55  ;;  %v3823_v38 = vld [vmem:[#allocation19] sm:$0xff] }
 0x30c   :  { %v1040_v15 = vpack.c.bf16 %v1017_v9, %v1016_v13  ;;  %v1042_v16 = vpack.c.bf16 %v1029_v10, %v1028_v14 }
 0x30d   :  { %v916_v33 = vpop.f32.mrf.mxu2 }
 0x30e   :  { %v979_v35 = vsub.f32 %v916_v33, %v953_v32  ;;  %v3805_v32 = vld [vmem:[#allocation20 + $0x10] sm:$0xff] }
 0x30f   :  { %v997_v34 = vpop.f32.mrf.mxu1  ;;  %v3807_v33 = vld [vmem:[#allocation19 + $0x10] sm:$0xff] }
 0x310   :  { %v998_v43 = vadd.f32 %v997_v34, %v974_v40  ;;  %v955_v46 = vpop.f32.mrf.mxu3  ;;  %v1010_v52 = vmul.f32 %v1002_v41, %v979_v35  ;;  %v1022_v28 = vmul.f32 %v1006_v42, %v979_v35  ;;  %v3813_v34 = vld [vmem:[#allocation20 + $0x8] sm:$0xff] }
 0x311   :  { %v3815_v35 = vld [vmem:[#allocation19 + $0x8] sm:$0xff] }
 0x312   :  { %v1015_v61 = vmul.f32 %v1007_v49, %v998_v43  ;;  %v1027_v62 = vmul.f32 %v1003_v48, %v998_v43  ;;  %v1018_v4 = vsub.f32 %v1010_v52, %v1014_v56  ;;  %v1030_v5 = vadd.f32 %v1026_v57, %v1022_v28 }
 0x315   :  { %v918_v37 = vpop.f32.mrf.mxu2 }
 0x316   :  { %v980_v53 = vsub.f32 %v918_v37, %v955_v46 }
 0x318   :  { %v1011_v63 = vmul.f32 %v1003_v48, %v980_v53  ;;  %v1023_v0 = vmul.f32 %v1007_v49, %v980_v53 }
 0x31a   :  { %v1019_v59 = vsub.f32 %v1011_v63, %v1015_v61  ;;  %v1031_v6 = vadd.f32 %v1027_v62, %v1023_v0 }
 0x31c   :  { %v1041_v11 = vpack.c.bf16 %v1019_v59, %v1018_v4  ;;  %v1043_v12 = vpack.c.bf16 %v1031_v6, %v1030_v5 }
 0x31e   :  { %1066 = vmatpush.bf16.msra.mxu2 %v1041_v11  ;;  %1101 = vmatpush.bf16.msra.mxu3 %v1043_v12 }
 0x31f   :  { %1120 = vmatpush.bf16.msrb.mxu0 %v1041_v11  ;;  %1143 = vmatpush.bf16.msrb.mxu1 %v1043_v12 }
 0x322   :  { %1067 = vmatpush.bf16.msra.mxu2 %v1040_v15  ;;  %1102 = vmatpush.bf16.msra.mxu3 %v1042_v16 }
 0x323   :  { %1121 = vmatpush.bf16.msrb.mxu0 %v1040_v15  ;;  %1144 = vmatpush.bf16.msrb.mxu1 %v1042_v16 }
 0x325   :  { %2614 = vmatmul.msk.bf16.vlgmr.msra.gmra.mxu2 %vm352_vm0, %v3745_v19  ;;  %2624 = vmatmul.msk.bf16.vlgmr.msra.gmra.mxu3 %vm352_vm0, %v3747_v20 }
 0x326   :  { %1307 = vmatpush.bf16.msrb.mxu3 %v3741_v17  ;;  %2626 = vmatmul.msk.bf16.vlgmr.msrb.gmra.mxu0 %vm352_vm0, %v3747_v20 }
 0x327   :  { %1326 = vmatpush.bf16.msra.mxu0 %v3743_v18  ;;  %2628 = vmatmul.msk.bf16.vlgmr.msrb.gmra.mxu1 %vm352_vm0, %v3745_v19 }
 0x328   :  { %1240 = vmatpush.bf16.msrb.mxu2 %v3743_v18  ;;  %1349 = vmatpush.bf16.msra.mxu1 %v3741_v17 }
 0x32a   :  { %1308 = vmatpush.bf16.msrb.mxu3 %v3751_v21 }
 0x32b   :  { %1327 = vmatpush.bf16.msra.mxu0 %v3753_v22 }
 0x32c   :  { %1241 = vmatpush.bf16.msrb.mxu2 %v3753_v22  ;;  %1350 = vmatpush.bf16.msra.mxu1 %v3751_v21 }
 0x32e   :  { %1309 = vmatpush.bf16.msrb.mxu3 %v3767_v23 }
 0x32f   :  { %1328 = vmatpush.bf16.msra.mxu0 %v3769_v24 }
 0x330   :  { %1242 = vmatpush.bf16.msrb.mxu2 %v3769_v24  ;;  %1351 = vmatpush.bf16.msra.mxu1 %v3767_v23 }
 0x332   :  { %1310 = vmatpush.bf16.msrb.mxu3 %v3775_v25 }
 0x333   :  { %1329 = vmatpush.bf16.msra.mxu0 %v3777_v26 }
 0x334   :  { %1243 = vmatpush.bf16.msrb.mxu2 %v3777_v26  ;;  %1352 = vmatpush.bf16.msra.mxu1 %v3775_v25 }
 0x335   :  { %2615 = vmatmul.msk.bf16.gmra.mxu2 %vm352_vm0, %v3787_v30  ;;  %2625 = vmatmul.msk.bf16.gmra.mxu3 %vm352_vm0, %v3789_v31 }
 0x336   :  { %1311 = vmatpush.bf16.msrb.mxu3 %v3783_v27  ;;  %2627 = vmatmul.msk.bf16.gmra.mxu0 %vm352_vm0, %v3789_v31 }
 0x337   :  { %1330 = vmatpush.bf16.msra.mxu0 %v3785_v29  ;;  %2629 = vmatmul.msk.bf16.gmra.mxu1 %vm352_vm0, %v3787_v30 }
 0x338   :  { %1244 = vmatpush.bf16.msrb.mxu2 %v3785_v29  ;;  %1353 = vmatpush.bf16.msra.mxu1 %v3783_v27 }
 0x33a   :  { %1312 = vmatpush.bf16.msrb.mxu3 %v3805_v32 }
 0x33b   :  { %1331 = vmatpush.bf16.msra.mxu0 %v3807_v33 }
 0x33c   :  { %1245 = vmatpush.bf16.msrb.mxu2 %v3807_v33  ;;  %1354 = vmatpush.bf16.msra.mxu1 %v3805_v32 }
 0x33e   :  { %1313 = vmatpush.bf16.msrb.mxu3 %v3813_v34 }
 0x33f   :  { %1332 = vmatpush.bf16.msra.mxu0 %v3815_v35 }
 0x340   :  { %1246 = vmatpush.bf16.msrb.mxu2 %v3815_v35  ;;  %1355 = vmatpush.bf16.msra.mxu1 %v3813_v34 }
 0x342   :  { %1314 = vmatpush.bf16.msrb.mxu3 %v3821_v36 }
 0x343   :  { %1333 = vmatpush.bf16.msra.mxu0 %v3823_v38 }
 0x344   :  { %1247 = vmatpush.bf16.msrb.mxu2 %v3823_v38  ;;  %1356 = vmatpush.bf16.msra.mxu1 %v3821_v36 }
 0x3a3   :  { %v1123_v40 = vpop.f32.mrf.mxu0 }
 0x3a4   :  { %v1146_v41 = vpop.f32.mrf.mxu1 }
 0x3a5   :  { %v1147_v46 = vadd.f32 %v1146_v41, %v1123_v40  ;;  %v1370_v41 = vld [vmem:[#allocation25 + $0x10] sm:$0xff] }
 0x3a8   :  { %v1069_v42 = vpop.f32.mrf.mxu2  ;;  %v1104_v43 = vpop.f32.mrf.mxu3 }
 0x3a9   :  { %v1133_v50 = vsub.f32 %v1069_v42, %v1104_v43  ;;  %v1374_v42 = vld [vmem:[#allocation26 + $0x10] sm:$0xff] }
 0x3ab   :  { %v1125_v44 = vpop.f32.mrf.mxu0 }
 0x3ac   :  { %v1148_v45 = vpop.f32.mrf.mxu1 }
 0x3ad   :  { %v1149_v48 = vadd.f32 %v1148_v45, %v1125_v44 }
 0x3af   :  { %v1190_v49 = vpack.c.bf16 %v1149_v48, %v1147_v46  ;;  %v1371_v48 = vld [vmem:[#allocation25 + $0x18] sm:$0xff] }
 0x3b0   :  { %v1071_v37 = vpop.f32.mrf.mxu2  ;;  %v1106_v47 = vpop.f32.mrf.mxu3 }
 0x3b1   :  { %1315 = vmatmul.bf16.vlgmr.msrb.gmra.mxu3 %v1190_v49  ;;  %1334 = vmatmul.bf16.vlgmr.msra.gmra.mxu0 %v1190_v49  ;;  %v1134_v51 = vsub.f32 %v1071_v37, %v1106_v47  ;;  %v1375_v49 = vld [vmem:[#allocation26 + $0x18] sm:$0xff] }
 0x3b3   :  { %v1188_v52 = vpack.c.bf16 %v1134_v51, %v1133_v50  ;;  %v1128_v28 = vpop.f32.mrf.mxu0  ;;  %v1369_v50 = vld [vmem:[#allocation25 + $0x8] sm:$0xff] }
 0x3b4   :  { %v1151_v53 = vpop.f32.mrf.mxu1  ;;  %v1373_v51 = vld [vmem:[#allocation26 + $0x8] sm:$0xff] }
 0x3b5   :  { %1248 = vmatmul.bf16.vlgmr.msrb.gmra.mxu2 %v1188_v52  ;;  %1357 = vmatmul.bf16.vlgmr.msra.gmra.mxu1 %v1188_v52  ;;  %v1152_v58 = vadd.f32 %v1151_v53, %v1128_v28 }
 0x3b8   :  { %v1074_v54 = vpop.f32.mrf.mxu2  ;;  %v1109_v55 = vpop.f32.mrf.mxu3 }
 0x3b9   :  { %v1135_v0 = vsub.f32 %v1074_v54, %v1109_v55 }
 0x3bb   :  { %v1130_v56 = vpop.f32.mrf.mxu0 }
 0x3bc   :  { %v1153_v57 = vpop.f32.mrf.mxu1 }
 0x3bd   :  { %v1154_v60 = vadd.f32 %v1153_v57, %v1130_v56 }
 0x3bf   :  { %v1191_v61 = vpack.c.bf16 %v1154_v60, %v1152_v58  ;;  %v1368_v58 = vld [vmem:[#allocation25] sm:$0xff] }
 0x3c0   :  { %v1076_v62 = vpop.f32.mrf.mxu2  ;;  %v1111_v63 = vpop.f32.mrf.mxu3  ;;  %v1372_v60 = vld [vmem:[#allocation26] sm:$0xff] }
 0x3c1   :  { %1320 = vmatmul.bf16.gmra.mxu3 %v1191_v61  ;;  %1339 = vmatmul.bf16.gmra.mxu0 %v1191_v61  ;;  %v1136_v39 = vsub.f32 %v1076_v62, %v1111_v63 }
 0x3c3   :  { %v1189_v1 = vpack.c.bf16 %v1136_v39, %v1135_v0 }
 0x3c5   :  { %1253 = vmatmul.bf16.gmra.mxu2 %v1189_v1  ;;  %1362 = vmatmul.bf16.gmra.mxu1 %v1189_v1 }
 0x42e   :  { %v1335_v2 = vpop.f32.mrf.mxu0 }
 0x432   :  { %v1358_v3 = vpop.f32.mrf.mxu1 }
 0x433   :  { %v1359_v47 = vadd.f32 %v1358_v3, %v1335_v2 }
 0x434   :  { %v1316_v4 = vpop.f32.mrf.mxu3 }
 0x436   :  { %v1337_v59 = vpop.f32.mrf.mxu0 }
 0x438   :  { %v1249_v5 = vpop.f32.mrf.mxu2 }
 0x439   :  { %v1345_v44 = vsub.f32 %v1249_v5, %v1316_v4 }
 0x43a   :  { %v1360_v6 = vpop.f32.mrf.mxu1 }
 0x43b   :  { %v1361_v45 = vadd.f32 %v1360_v6, %v1337_v59  ;;  %v1376_v39 = vmul.f32 %v1368_v58, %v1345_v44  ;;  %v1388_v1 = vmul.f32 %v1372_v60, %v1345_v44  ;;  %v3842_v44 = vld [vmem:[#allocation14 + $0x30] sm:$0xff] }
 0x43c   :  { %v1318_v7 = vpop.f32.mrf.mxu3 }
 0x43d   :  { %v1381_v4 = vmul.f32 %v1373_v51, %v1361_v45  ;;  %v1393_v5 = vmul.f32 %v1369_v50, %v1361_v45  ;;  %v3847_v45 = vld [vmem:[%s4080_s10 + $0x30] sm:$0xff] }
 0x43e   :  { %v1340_v10 = vpop.f32.mrf.mxu0 }
 0x440   :  { %v1251_v8 = vpop.f32.mrf.mxu2 }
 0x441   :  { %v1346_v15 = vsub.f32 %v1251_v8, %v1318_v7  ;;  %v1380_v7 = vmul.f32 %v1372_v60, %v1359_v47  ;;  %v1392_v8 = vmul.f32 %v1368_v58, %v1359_v47  ;;  %v3883_v47 = vld [vmem:[#allocation14 + $0x18] sm:$0xff] }
 0x442   :  { %v1363_v9 = vpop.f32.mrf.mxu1  ;;  %4139 = vst [vmem:[#allocation43_spill] sm:$0xff] %v3883_v47 }
 0x443   :  { %v1364_v16 = vadd.f32 %v1363_v9, %v1340_v10  ;;  %v1377_v54 = vmul.f32 %v1369_v50, %v1346_v15  ;;  %v1389_v55 = vmul.f32 %v1373_v51, %v1346_v15  ;;  %v3888_v50 = vld [vmem:[%s4080_s10 + $0x18] sm:$0xff]  ;;  %v3890_v51 = vld [vmem:[#allocation11 + $0x8] sm:$0xff] }
 0x444   :  { %v1321_v11 = vpop.f32.mrf.mxu3  ;;  %4140 = vst [vmem:[#allocation44_spill] sm:$0xff] %v3888_v50 }
 0x445   :  { %v1382_v56 = vmul.f32 %v1374_v42, %v1364_v16  ;;  %v1394_v57 = vmul.f32 %v1370_v41, %v1364_v16  ;;  %v1385_v9 = vsub.f32 %v1377_v54, %v1381_v4  ;;  %v1397_v10 = vadd.f32 %v1393_v5, %v1389_v55  ;;  %4141 = vst [vmem:[#allocation45_spill] sm:$0xff] %v3890_v51  ;;  %v3919_v54 = vld [vmem:[#allocation14 + $0x8] sm:$0xff] }
 0x446   :  { %v1342_v40 = vpop.f32.mrf.mxu0  ;;  %4145 = vst [vmem:[#allocation49_spill] sm:$0xff] %v3919_v54  ;;  %v3924_v55 = vld [vmem:[%s4080_s10 + $0x8] sm:$0xff] }
 0x447   :  { %4146 = vst [vmem:[#allocation50_spill] sm:$0xff] %v3924_v55 }
 0x448   :  { %v1254_v12 = vpop.f32.mrf.mxu2 }
 0x449   :  { %v1347_v14 = vsub.f32 %v1254_v12, %v1321_v11 }
 0x44a   :  { %v1365_v13 = vpop.f32.mrf.mxu1 }
 0x44b   :  { %v1366_v43 = vadd.f32 %v1365_v13, %v1342_v40  ;;  %v1378_v52 = vmul.f32 %v1370_v41, %v1347_v14  ;;  %v1390_v28 = vmul.f32 %v1374_v42, %v1347_v14  ;;  %v1384_v13 = vsub.f32 %v1376_v39, %v1380_v7  ;;  %v3829_v40 = vld [vmem:[#allocation14 + $0x38] sm:$0xff]  ;;  %v3836_v42 = vld [vmem:[#allocation11] sm:$0xff] }
 0x44c   :  { %v1323_v46 = vpop.f32.mrf.mxu3  ;;  %v1396_v14 = vadd.f32 %v1392_v8, %v1388_v1  ;;  %v3834_v41 = vld [vmem:[%s4080_s10 + $0x38] sm:$0xff] }
 0x44d   :  { %v1383_v61 = vmul.f32 %v1375_v49, %v1366_v43  ;;  %v1395_v62 = vmul.f32 %v1371_v48, %v1366_v43  ;;  %v1386_v2 = vsub.f32 %v1378_v52, %v1382_v56  ;;  %v1398_v3 = vadd.f32 %v1394_v57, %v1390_v28  ;;  %v3838_v43 = vld [vmem:[#allocation13] sm:$0xff]  ;;  %v3892_v52 = vld [vmem:[#allocation13 + $0x8] sm:$0xff]  ;;  %v3930_v56 = vld [vmem:[#allocation14] sm:$0xff] }
 0x44e   :  { %v1408_v15 = vpack.c.bf16 %v1385_v9, %v1384_v13  ;;  %v1410_v16 = vpack.c.bf16 %v1397_v10, %v1396_v14  ;;  %4142 = vst [vmem:[#allocation46_spill] sm:$0xff] %v3892_v52  ;;  %v3908_v28 = vld [vmem:[#allocation14 + $0x10] sm:$0xff]  ;;  %v3935_v57 = vld [vmem:[%s4080_s10] sm:$0xff] }
 0x44f   :  { %4143 = vst [vmem:[#allocation47_spill] sm:$0xff] %v3908_v28 }
 0x450   :  { %v1256_v37 = vpop.f32.mrf.mxu2  ;;  %4147 = vst [vmem:[#allocation51_spill] sm:$0xff] %v3930_v56 }
 0x451   :  { %v1348_v53 = vsub.f32 %v1256_v37, %v1323_v46  ;;  %v3861_v46 = vld [vmem:[#allocation14 + $0x28] sm:$0xff]  ;;  %v3877_v37 = vld [vmem:[%s4080_s10 + $0x20] sm:$0xff]  ;;  %4148 = vst [vmem:[#allocation52_spill] sm:$0xff] %v3935_v57 }
 0x452   :  { %4138 = vst [vmem:[#allocation42_spill] sm:$0xff] %v3877_v37 }
 0x453   :  { %v1379_v63 = vmul.f32 %v1371_v48, %v1348_v53  ;;  %v1391_v0 = vmul.f32 %v1375_v49, %v1348_v53  ;;  %v3866_v48 = vld [vmem:[%s4080_s10 + $0x28] sm:$0xff]  ;;  %v3872_v49 = vld [vmem:[#allocation14 + $0x20] sm:$0xff]  ;;  %v3913_v53 = vld [vmem:[%s4080_s10 + $0x10] sm:$0xff] }
 0x454   :  { %4136 = vst [vmem:[#allocation40_spill] sm:$0xff] %v3866_v48 }
 0x455   :  { %v1387_v59 = vsub.f32 %v1379_v63, %v1383_v61  ;;  %v1399_v6 = vadd.f32 %v1395_v62, %v1391_v0  ;;  %4137 = vst [vmem:[#allocation41_spill] sm:$0xff] %v3872_v49 }
 0x456   :  { %4144 = vst [vmem:[#allocation48_spill] sm:$0xff] %v3913_v53 }
 0x457   :  { %v1409_v11 = vpack.c.bf16 %v1387_v59, %v1386_v2  ;;  %v1411_v12 = vpack.c.bf16 %v1399_v6, %v1398_v3 }
 0x459   :  { %1434 = vmatpush.bf16.msra.mxu2 %v1409_v11  ;;  %1469 = vmatpush.bf16.msra.mxu3 %v1411_v12 }
 0x45a   :  { %1488 = vmatpush.bf16.msrb.mxu0 %v1409_v11  ;;  %1511 = vmatpush.bf16.msrb.mxu1 %v1411_v12 }
 0x45d   :  { %1435 = vmatpush.bf16.msra.mxu2 %v1408_v15  ;;  %1470 = vmatpush.bf16.msra.mxu3 %v1410_v16 }
 0x45e   :  { %1489 = vmatpush.bf16.msrb.mxu0 %v1408_v15  ;;  %1512 = vmatpush.bf16.msrb.mxu1 %v1410_v16 }
 0x460   :  { %2702 = vmatmul.msk.bf16.vlgmr.msra.gmra.mxu2 %vm352_vm0, %v3836_v42  ;;  %2712 = vmatmul.msk.bf16.vlgmr.msra.gmra.mxu3 %vm352_vm0, %v3838_v43 }
 0x461   :  { %1675 = vmatpush.bf16.msrb.mxu3 %v3829_v40  ;;  %2714 = vmatmul.msk.bf16.vlgmr.msrb.gmra.mxu0 %vm352_vm0, %v3838_v43 }
 0x462   :  { %1694 = vmatpush.bf16.msra.mxu0 %v3834_v41  ;;  %2716 = vmatmul.msk.bf16.vlgmr.msrb.gmra.mxu1 %vm352_vm0, %v3836_v42 }
 0x463   :  { %1608 = vmatpush.bf16.msrb.mxu2 %v3834_v41  ;;  %1717 = vmatpush.bf16.msra.mxu1 %v3829_v40 }
 0x465   :  { %1676 = vmatpush.bf16.msrb.mxu3 %v3842_v44 }
 0x466   :  { %1695 = vmatpush.bf16.msra.mxu0 %v3847_v45 }
 0x467   :  { %1609 = vmatpush.bf16.msrb.mxu2 %v3847_v45  ;;  %1718 = vmatpush.bf16.msra.mxu1 %v3842_v44 }
 0x469   :  { %1677 = vmatpush.bf16.msrb.mxu3 %v3861_v46 }
 0x46a   :  { %1696 = vmatpush.bf16.msra.mxu0 %v3866_v48 }
 0x46b   :  { %1610 = vmatpush.bf16.msrb.mxu2 %v3866_v48  ;;  %1719 = vmatpush.bf16.msra.mxu1 %v3861_v46 }
 0x46d   :  { %1678 = vmatpush.bf16.msrb.mxu3 %v3872_v49 }
 0x46e   :  { %1697 = vmatpush.bf16.msra.mxu0 %v3877_v37 }
 0x46f   :  { %1611 = vmatpush.bf16.msrb.mxu2 %v3877_v37  ;;  %1720 = vmatpush.bf16.msra.mxu1 %v3872_v49 }
 0x470   :  { %2703 = vmatmul.msk.bf16.gmra.mxu2 %vm352_vm0, %v3890_v51  ;;  %2713 = vmatmul.msk.bf16.gmra.mxu3 %vm352_vm0, %v3892_v52 }
 0x471   :  { %1679 = vmatpush.bf16.msrb.mxu3 %v3883_v47  ;;  %2715 = vmatmul.msk.bf16.gmra.mxu0 %vm352_vm0, %v3892_v52 }
 0x472   :  { %1698 = vmatpush.bf16.msra.mxu0 %v3888_v50  ;;  %2717 = vmatmul.msk.bf16.gmra.mxu1 %vm352_vm0, %v3890_v51 }
 0x473   :  { %1612 = vmatpush.bf16.msrb.mxu2 %v3888_v50  ;;  %1721 = vmatpush.bf16.msra.mxu1 %v3883_v47 }
 0x475   :  { %1680 = vmatpush.bf16.msrb.mxu3 %v3908_v28 }
 0x476   :  { %1699 = vmatpush.bf16.msra.mxu0 %v3913_v53 }
 0x477   :  { %1613 = vmatpush.bf16.msrb.mxu2 %v3913_v53  ;;  %1722 = vmatpush.bf16.msra.mxu1 %v3908_v28  ;;  %v1743_v53 = vld [vmem:[#allocation23 + $0x28] sm:$0xff] }
 0x479   :  { %1681 = vmatpush.bf16.msrb.mxu3 %v3919_v54 }
 0x47a   :  { %1700 = vmatpush.bf16.msra.mxu0 %v3924_v55 }
 0x47b   :  { %1614 = vmatpush.bf16.msrb.mxu2 %v3924_v55  ;;  %1723 = vmatpush.bf16.msra.mxu1 %v3919_v54  ;;  %v1738_v54 = vld [vmem:[#allocation22 + $0x28] sm:$0xff] }
 0x47d   :  { %1682 = vmatpush.bf16.msrb.mxu3 %v3930_v56 }
 0x47e   :  { %1701 = vmatpush.bf16.msra.mxu0 %v3935_v57 }
 0x47f   :  { %1615 = vmatpush.bf16.msrb.mxu2 %v3935_v57  ;;  %1724 = vmatpush.bf16.msra.mxu1 %v3930_v56  ;;  %v1745_v57 = vld [vmem:[#allocation23 + $0x38] sm:$0xff] }
 0x4de   :  { %v1491_v58 = vpop.f32.mrf.mxu0 }
 0x4df   :  { %v1514_v60 = vpop.f32.mrf.mxu1 }
 0x4e0   :  { %v1515_v39 = vadd.f32 %v1514_v60, %v1491_v58 }
 0x4e3   :  { %v1437_v61 = vpop.f32.mrf.mxu2  ;;  %v1472_v62 = vpop.f32.mrf.mxu3 }
 0x4e4   :  { %v1501_v3 = vsub.f32 %v1437_v61, %v1472_v62 }
 0x4e6   :  { %v1493_v63 = vpop.f32.mrf.mxu0 }
 0x4e7   :  { %v1516_v0 = vpop.f32.mrf.mxu1 }
 0x4e8   :  { %v1517_v1 = vadd.f32 %v1516_v0, %v1493_v63 }
 0x4ea   :  { %v1558_v4 = vpack.c.bf16 %v1517_v1, %v1515_v39 }
 0x4eb   :  { %v1439_v5 = vpop.f32.mrf.mxu2  ;;  %v1474_v2 = vpop.f32.mrf.mxu3 }
 0x4ec   :  { %1683 = vmatmul.bf16.vlgmr.msrb.gmra.mxu3 %v1558_v4  ;;  %1702 = vmatmul.bf16.vlgmr.msra.gmra.mxu0 %v1558_v4  ;;  %v1502_v59 = vsub.f32 %v1439_v5, %v1474_v2 }
 0x4ee   :  { %v1556_v6 = vpack.c.bf16 %v1502_v59, %v1501_v3  ;;  %v1496_v7 = vpop.f32.mrf.mxu0 }
 0x4ef   :  { %v1519_v8 = vpop.f32.mrf.mxu1 }
 0x4f0   :  { %1616 = vmatmul.bf16.vlgmr.msrb.gmra.mxu2 %v1556_v6  ;;  %1725 = vmatmul.bf16.vlgmr.msra.gmra.mxu1 %v1556_v6  ;;  %v1520_v13 = vadd.f32 %v1519_v8, %v1496_v7 }
 0x4f3   :  { %v1442_v9 = vpop.f32.mrf.mxu2  ;;  %v1477_v10 = vpop.f32.mrf.mxu3 }
 0x4f4   :  { %v1503_v60 = vsub.f32 %v1442_v9, %v1477_v10 }
 0x4f6   :  { %v1498_v11 = vpop.f32.mrf.mxu0 }
 0x4f7   :  { %v1521_v12 = vpop.f32.mrf.mxu1 }
 0x4f8   :  { %v1522_v14 = vadd.f32 %v1521_v12, %v1498_v11 }
 0x4fa   :  { %v1559_v15 = vpack.c.bf16 %v1522_v14, %v1520_v13  ;;  %v1739_v14 = vld [vmem:[#allocation22 + $0x30] sm:$0xff] }
 0x4fb   :  { %v1444_v16 = vpop.f32.mrf.mxu2  ;;  %v1479_v58 = vpop.f32.mrf.mxu3 }
 0x4fc   :  { %1688 = vmatmul.bf16.gmra.mxu3 %v1559_v15  ;;  %1707 = vmatmul.bf16.gmra.mxu0 %v1559_v15  ;;  %v1504_v63 = vsub.f32 %v1444_v16, %v1479_v58  ;;  %v1744_v15 = vld [vmem:[#allocation23 + $0x30] sm:$0xff] }
 0x4fe   :  { %v1557_v61 = vpack.c.bf16 %v1504_v63, %v1503_v60 }
 0x500   :  { %1621 = vmatmul.bf16.gmra.mxu2 %v1557_v61  ;;  %1730 = vmatmul.bf16.gmra.mxu1 %v1557_v61  ;;  %v1740_v61 = vld [vmem:[#allocation22 + $0x38] sm:$0xff] }
 0x569   :  { %v1703_v62 = vpop.f32.mrf.mxu0 }
 0x56d   :  { %v1726_v0 = vpop.f32.mrf.mxu1 }
 0x56e   :  { %v1727_v55 = vadd.f32 %v1726_v0, %v1703_v62 }
 0x56f   :  { %v1684_v39 = vpop.f32.mrf.mxu3 }
 0x571   :  { %v1705_v4 = vpop.f32.mrf.mxu0 }
 0x573   :  { %v1617_v1 = vpop.f32.mrf.mxu2 }
 0x574   :  { %v1713_v58 = vsub.f32 %v1617_v1, %v1684_v39 }
 0x575   :  { %v1728_v5 = vpop.f32.mrf.mxu1 }
 0x576   :  { %v1729_v60 = vadd.f32 %v1728_v5, %v1705_v4 }
 0x577   :  { %v1686_v2 = vpop.f32.mrf.mxu3 }
 0x578   :  { %v1763_v47 = vmul.f32 %v1738_v54, %v1729_v60 }
 0x579   :  { %v1708_v6 = vpop.f32.mrf.mxu0 }
 0x57b   :  { %v1619_v3 = vpop.f32.mrf.mxu2 }
 0x57c   :  { %v1714_v13 = vsub.f32 %v1619_v3, %v1686_v2 }
 0x57d   :  { %v1731_v59 = vpop.f32.mrf.mxu1 }
 0x57e   :  { %v1732_v9 = vadd.f32 %v1731_v59, %v1708_v6  ;;  %v1747_v50 = vmul.f32 %v1738_v54, %v1714_v13  ;;  %v1737_v59 = vld [vmem:[#allocation22 + $0x20] sm:$0xff] }
 0x57f   :  { %v1689_v7 = vpop.f32.mrf.mxu3  ;;  %v1742_v6 = vld [vmem:[#allocation23 + $0x20] sm:$0xff]  ;;  %v1746_v4 = vmul.f32 %v1737_v59, %v1713_v58 }
 0x580   :  { %v1752_v2 = vmul.f32 %v1744_v15, %v1732_v9  ;;  %v1764_v3 = vmul.f32 %v1739_v14, %v1732_v9  ;;  %v1758_v5 = vmul.f32 %v1742_v6, %v1713_v58 }
 0x581   :  { %v1710_v10 = vpop.f32.mrf.mxu0 }
 0x583   :  { %v1622_v8 = vpop.f32.mrf.mxu2 }
 0x584   :  { %v1715_v12 = vsub.f32 %v1622_v8, %v1689_v7  ;;  %v1759_v7 = vmul.f32 %v1743_v53, %v1714_v13 }
 0x585   :  { %v1733_v11 = vpop.f32.mrf.mxu1 }
 0x586   :  { %v1734_v16 = vadd.f32 %v1733_v11, %v1710_v10  ;;  %v1748_v28 = vmul.f32 %v1739_v14, %v1715_v12  ;;  %v1760_v52 = vmul.f32 %v1744_v15, %v1715_v12  ;;  %v1751_v10 = vmul.f32 %v1743_v53, %v1729_v60 }
 0x587   :  { %v1691_v63 = vpop.f32.mrf.mxu3  ;;  %v1750_v12 = vmul.f32 %v1742_v6, %v1727_v55  ;;  %v1767_v13 = vadd.f32 %v1763_v47, %v1759_v7 }
 0x588   :  { %v1753_v8 = vmul.f32 %v1745_v57, %v1734_v16  ;;  %v1765_v11 = vmul.f32 %v1740_v61, %v1734_v16  ;;  %v1756_v62 = vsub.f32 %v1748_v28, %v1752_v2  ;;  %v1768_v0 = vadd.f32 %v1764_v3, %v1760_v52 }
 0x589   :  { %v1754_v14 = vsub.f32 %v1746_v4, %v1750_v12 }
 0x58b   :  { %v1624_v56 = vpop.f32.mrf.mxu2 }
 0x58c   :  { %v1716_v51 = vsub.f32 %v1624_v56, %v1691_v63  ;;  %v1762_v56 = vmul.f32 %v1737_v59, %v1727_v55  ;;  %v1755_v63 = vsub.f32 %v1747_v50, %v1751_v10  ;;  %v1941_v10 = vld [vmem:[#allocation25 + $0x30] sm:$0xff] }
 0x58e   :  { %v1749_v39 = vmul.f32 %v1740_v61, %v1716_v51  ;;  %v1761_v1 = vmul.f32 %v1745_v57, %v1716_v51  ;;  %v1766_v48 = vadd.f32 %v1762_v56, %v1758_v5  ;;  %v1770_v51 = vpack.c.bf16 %v1755_v63, %v1754_v14 }
 0x590   :  { %v1757_v37 = vsub.f32 %v1749_v39, %v1753_v8  ;;  %v1769_v49 = vadd.f32 %v1765_v11, %v1761_v1  ;;  %v1772_v57 = vpack.c.bf16 %v1767_v13, %v1766_v48  ;;  %v1942_v13 = vld [vmem:[#allocation25 + $0x38] sm:$0xff] }
 0x592   :  { %v1771_v15 = vpack.c.bf16 %v1757_v37, %v1756_v62  ;;  %v1773_v9 = vpack.c.bf16 %v1769_v49, %v1768_v0  ;;  %v1946_v62 = vld [vmem:[#allocation26 + $0x30] sm:$0xff] }
 0x594   :  { %1780 = vmatpush.bf16.msra.mxu2 %v1771_v15  ;;  %1799 = vmatpush.bf16.msra.mxu3 %v1773_v9 }
 0x595   :  { %1818 = vmatpush.bf16.msrb.mxu0 %v1771_v15  ;;  %1841 = vmatpush.bf16.msrb.mxu1 %v1773_v9  ;;  %v1947_v15 = vld [vmem:[#allocation26 + $0x38] sm:$0xff] }
 0x598   :  { %1781 = vmatpush.bf16.msra.mxu2 %v1770_v51  ;;  %1800 = vmatpush.bf16.msra.mxu3 %v1772_v57 }
 0x599   :  { %1819 = vmatpush.bf16.msrb.mxu0 %v1770_v51  ;;  %1842 = vmatpush.bf16.msrb.mxu1 %v1772_v57  ;;  %v1940_v51 = vld [vmem:[#allocation25 + $0x28] sm:$0xff] }
 0x59a   :  { %v1945_v57 = vld [vmem:[#allocation26 + $0x28] sm:$0xff] }
 0x59b   :  { %2782 = vmatmul.msk.bf16.vlgmr.msra.gmra.mxu2 %vm352_vm0, %v3745_v19  ;;  %2784 = vmatmul.msk.bf16.vlgmr.msra.gmra.mxu3 %vm352_vm0, %v3747_v20 }
 0x59c   :  { %1877 = vmatpush.bf16.msrb.mxu3 %v3741_v17  ;;  %2786 = vmatmul.msk.bf16.vlgmr.msrb.gmra.mxu0 %vm352_vm0, %v3747_v20 }
 0x59d   :  { %1896 = vmatpush.bf16.msra.mxu0 %v3743_v18  ;;  %2788 = vmatmul.msk.bf16.vlgmr.msrb.gmra.mxu1 %vm352_vm0, %v3745_v19 }
 0x59e   :  { %1858 = vmatpush.bf16.msrb.mxu2 %v3743_v18  ;;  %1919 = vmatpush.bf16.msra.mxu1 %v3741_v17 }
 0x5a0   :  { %1878 = vmatpush.bf16.msrb.mxu3 %v3751_v21 }
 0x5a1   :  { %1897 = vmatpush.bf16.msra.mxu0 %v3753_v22 }
 0x5a2   :  { %1859 = vmatpush.bf16.msrb.mxu2 %v3753_v22  ;;  %1920 = vmatpush.bf16.msra.mxu1 %v3751_v21 }
 0x5a4   :  { %1879 = vmatpush.bf16.msrb.mxu3 %v3767_v23 }
 0x5a5   :  { %1898 = vmatpush.bf16.msra.mxu0 %v3769_v24 }
 0x5a6   :  { %1860 = vmatpush.bf16.msrb.mxu2 %v3769_v24  ;;  %1921 = vmatpush.bf16.msra.mxu1 %v3767_v23 }
 0x5a8   :  { %1880 = vmatpush.bf16.msrb.mxu3 %v3775_v25 }
 0x5a9   :  { %1899 = vmatpush.bf16.msra.mxu0 %v3777_v26 }
 0x5aa   :  { %1861 = vmatpush.bf16.msrb.mxu2 %v3777_v26  ;;  %1922 = vmatpush.bf16.msra.mxu1 %v3775_v25 }
 0x5ab   :  { %2783 = vmatmul.msk.bf16.gmra.mxu2 %vm352_vm0, %v3787_v30  ;;  %2785 = vmatmul.msk.bf16.gmra.mxu3 %vm352_vm0, %v3789_v31 }
 0x5ac   :  { %1881 = vmatpush.bf16.msrb.mxu3 %v3783_v27  ;;  %2787 = vmatmul.msk.bf16.gmra.mxu0 %vm352_vm0, %v3789_v31 }
 0x5ad   :  { %1900 = vmatpush.bf16.msra.mxu0 %v3785_v29  ;;  %2789 = vmatmul.msk.bf16.gmra.mxu1 %vm352_vm0, %v3787_v30 }
 0x5ae   :  { %1862 = vmatpush.bf16.msrb.mxu2 %v3785_v29  ;;  %1923 = vmatpush.bf16.msra.mxu1 %v3783_v27 }
 0x5b0   :  { %1882 = vmatpush.bf16.msrb.mxu3 %v3805_v32 }
 0x5b1   :  { %1901 = vmatpush.bf16.msra.mxu0 %v3807_v33 }
 0x5b2   :  { %1863 = vmatpush.bf16.msrb.mxu2 %v3807_v33  ;;  %1924 = vmatpush.bf16.msra.mxu1 %v3805_v32 }
 0x5b4   :  { %1883 = vmatpush.bf16.msrb.mxu3 %v3813_v34 }
 0x5b5   :  { %1902 = vmatpush.bf16.msra.mxu0 %v3815_v35 }
 0x5b6   :  { %1864 = vmatpush.bf16.msrb.mxu2 %v3815_v35  ;;  %1925 = vmatpush.bf16.msra.mxu1 %v3813_v34 }
 0x5b8   :  { %1884 = vmatpush.bf16.msrb.mxu3 %v3821_v36 }
 0x5b9   :  { %1903 = vmatpush.bf16.msra.mxu0 %v3823_v38 }
 0x5ba   :  { %1865 = vmatpush.bf16.msrb.mxu2 %v3823_v38  ;;  %1926 = vmatpush.bf16.msra.mxu1 %v3821_v36 }
 0x619   :  { %v1821_v17 = vpop.f32.mrf.mxu0 }
 0x61a   :  { %v1844_v18 = vpop.f32.mrf.mxu1 }
 0x61b   :  { %v1845_v23 = vadd.f32 %v1844_v18, %v1821_v17 }
 0x61e   :  { %v1783_v19 = vpop.f32.mrf.mxu2  ;;  %v1802_v20 = vpop.f32.mrf.mxu3 }
 0x61f   :  { %v1831_v29 = vsub.f32 %v1783_v19, %v1802_v20 }
 0x621   :  { %v1823_v21 = vpop.f32.mrf.mxu0 }
 0x622   :  { %v1846_v22 = vpop.f32.mrf.mxu1 }
 0x623   :  { %v1847_v24 = vadd.f32 %v1846_v22, %v1823_v21 }
 0x625   :  { %v1856_v25 = vpack.c.bf16 %v1847_v24, %v1845_v23  ;;  %v1939_v24 = vld [vmem:[#allocation25 + $0x20] sm:$0xff] }
 0x626   :  { %v1785_v26 = vpop.f32.mrf.mxu2  ;;  %v1804_v27 = vpop.f32.mrf.mxu3 }
 0x627   :  { %1885 = vmatmul.bf16.vlgmr.msrb.gmra.mxu3 %v1856_v25  ;;  %1904 = vmatmul.bf16.vlgmr.msra.gmra.mxu0 %v1856_v25  ;;  %v1832_v30 = vsub.f32 %v1785_v26, %v1804_v27  ;;  %v1944_v25 = vld [vmem:[#allocation26 + $0x20] sm:$0xff] }
 0x629   :  { %v1854_v31 = vpack.c.bf16 %v1832_v30, %v1831_v29  ;;  %v1826_v32 = vpop.f32.mrf.mxu0 }
 0x62a   :  { %v1849_v33 = vpop.f32.mrf.mxu1 }
 0x62b   :  { %1866 = vmatmul.bf16.vlgmr.msrb.gmra.mxu2 %v1854_v31  ;;  %1927 = vmatmul.bf16.vlgmr.msra.gmra.mxu1 %v1854_v31  ;;  %v1850_v48 = vadd.f32 %v1849_v33, %v1826_v32 }
 0x62e   :  { %v1788_v34 = vpop.f32.mrf.mxu2  ;;  %v1807_v35 = vpop.f32.mrf.mxu3 }
 0x62f   :  { %v1833_v52 = vsub.f32 %v1788_v34, %v1807_v35 }
 0x631   :  { %v1828_v36 = vpop.f32.mrf.mxu0 }
 0x632   :  { %v1851_v38 = vpop.f32.mrf.mxu1 }
 0x633   :  { %v1852_v49 = vadd.f32 %v1851_v38, %v1828_v36 }
 0x635   :  { %v1857_v37 = vpack.c.bf16 %v1852_v49, %v1850_v48 }
 0x636   :  { %v1790_v47 = vpop.f32.mrf.mxu2  ;;  %v1809_v50 = vpop.f32.mrf.mxu3 }
 0x637   :  { %1890 = vmatmul.bf16.gmra.mxu3 %v1857_v37  ;;  %1909 = vmatmul.bf16.gmra.mxu0 %v1857_v37  ;;  %v1834_v28 = vsub.f32 %v1790_v47, %v1809_v50 }
 0x639   :  { %v1855_v53 = vpack.c.bf16 %v1834_v28, %v1833_v52 }
 0x63b   :  { %1871 = vmatmul.bf16.gmra.mxu2 %v1855_v53  ;;  %1932 = vmatmul.bf16.gmra.mxu1 %v1855_v53 }
 0x6a4   :  { %v1905_v54 = vpop.f32.mrf.mxu0 }
 0x6a8   :  { %v1928_v55 = vpop.f32.mrf.mxu1 }
 0x6a9   :  { %v1929_v14 = vadd.f32 %v1928_v55, %v1905_v54 }
 0x6aa   :  { %v1886_v16 = vpop.f32.mrf.mxu3 }
 0x6ab   :  { %v1952_v49 = vmul.f32 %v1944_v25, %v1929_v14  ;;  %v1964_v37 = vmul.f32 %v1939_v24, %v1929_v14 }
 0x6ac   :  { %v1907_v60 = vpop.f32.mrf.mxu0 }
 0x6ae   :  { %v1867_v58 = vpop.f32.mrf.mxu2 }
 0x6af   :  { %v1915_v12 = vsub.f32 %v1867_v58, %v1886_v16  ;;  %v4149_v58 = vld [vmem:[#allocation40_spill] sm:$0xff] }
 0x6b0   :  { %v1930_v61 = vpop.f32.mrf.mxu1 }
 0x6b1   :  { %v1931_v56 = vadd.f32 %v1930_v61, %v1907_v60  ;;  %v1948_v31 = vmul.f32 %v1939_v24, %v1915_v12  ;;  %v1960_v32 = vmul.f32 %v1944_v25, %v1915_v12  ;;  %v4157_v60 = vld [vmem:[#allocation48_spill] sm:$0xff]  ;;  %v4158_v61 = vld [vmem:[#allocation49_spill] sm:$0xff] }
 0x6b2   :  { %v1888_v7 = vpop.f32.mrf.mxu3 }
 0x6b3   :  { %v1953_v33 = vmul.f32 %v1945_v57, %v1931_v56  ;;  %v1965_v34 = vmul.f32 %v1940_v51, %v1931_v56  ;;  %v1956_v53 = vsub.f32 %v1948_v31, %v1952_v49  ;;  %v1968_v54 = vadd.f32 %v1964_v37, %v1960_v32 }
 0x6b4   :  { %v1910_v59 = vpop.f32.mrf.mxu0 }
 0x6b6   :  { %v1869_v2 = vpop.f32.mrf.mxu2 }
 0x6b7   :  { %v1916_v1 = vsub.f32 %v1869_v2, %v1888_v7  ;;  %v4159_v7 = vld [vmem:[#allocation50_spill] sm:$0xff]  ;;  %v4160_v2 = vld [vmem:[#allocation51_spill] sm:$0xff] }
 0x6b8   :  { %v1933_v3 = vpop.f32.mrf.mxu1 }
 0x6b9   :  { %v1934_v4 = vadd.f32 %v1933_v3, %v1910_v59  ;;  %v1949_v20 = vmul.f32 %v1940_v51, %v1916_v1  ;;  %v1961_v21 = vmul.f32 %v1945_v57, %v1916_v1  ;;  %v4161_v3 = vld [vmem:[#allocation52_spill] sm:$0xff] }
 0x6ba   :  { %v1891_v6 = vpop.f32.mrf.mxu3 }
 0x6bb   :  { %v1954_v22 = vmul.f32 %v1946_v62, %v1934_v4  ;;  %v1966_v23 = vmul.f32 %v1941_v10, %v1934_v4  ;;  %v1957_v47 = vsub.f32 %v1949_v20, %v1953_v33  ;;  %v1969_v50 = vadd.f32 %v1965_v34, %v1961_v21 }
 0x6bc   :  { %v1912_v5 = vpop.f32.mrf.mxu0 }
 0x6bd   :  { %v1972_v55 = vpack.c.bf16 %v1957_v47, %v1956_v53  ;;  %v1974_v16 = vpack.c.bf16 %v1969_v50, %v1968_v54 }
 0x6be   :  { %v1872_v8 = vpop.f32.mrf.mxu2 }
 0x6bf   :  { %v1917_v39 = vsub.f32 %v1872_v8, %v1891_v6 }
 0x6c0   :  { %v1935_v11 = vpop.f32.mrf.mxu1 }
 0x6c1   :  { %v1936_v0 = vadd.f32 %v1935_v11, %v1912_v5  ;;  %v1950_v17 = vmul.f32 %v1941_v10, %v1917_v39  ;;  %v1962_v18 = vmul.f32 %v1946_v62, %v1917_v39 }
 0x6c2   :  { %v1893_v63 = vpop.f32.mrf.mxu3 }
 0x6c3   :  { %v1955_v26 = vmul.f32 %v1947_v15, %v1936_v0  ;;  %v1967_v27 = vmul.f32 %v1942_v13, %v1936_v0  ;;  %v1958_v35 = vsub.f32 %v1950_v17, %v1954_v22  ;;  %v1970_v36 = vadd.f32 %v1966_v23, %v1962_v18 }
 0x6c6   :  { %v1874_v9 = vpop.f32.mrf.mxu2 }
 0x6c7   :  { %v1918_v19 = vsub.f32 %v1874_v9, %v1893_v63 }
 0x6c9   :  { %v1951_v29 = vmul.f32 %v1942_v13, %v1918_v19  ;;  %v1963_v30 = vmul.f32 %v1947_v15, %v1918_v19 }
 0x6cb   :  { %v1959_v38 = vsub.f32 %v1951_v29, %v1955_v26  ;;  %v1971_v48 = vadd.f32 %v1967_v27, %v1963_v30 }
 0x6cd   :  { %v1973_v52 = vpack.c.bf16 %v1959_v38, %v1958_v35  ;;  %v1975_v28 = vpack.c.bf16 %v1971_v48, %v1970_v36 }
 0x6cf   :  { %1982 = vmatpush.bf16.msra.mxu2 %v1973_v52  ;;  %2001 = vmatpush.bf16.msra.mxu3 %v1975_v28 }
 0x6d0   :  { %2020 = vmatpush.bf16.msrb.mxu0 %v1973_v52  ;;  %2043 = vmatpush.bf16.msrb.mxu1 %v1975_v28  ;;  %v2143_v52 = vld [vmem:[#allocation22 + $0x50] sm:$0xff] }
 0x6d1   :  { %v2148_v28 = vld [vmem:[#allocation23 + $0x50] sm:$0xff] }
 0x6d3   :  { %1983 = vmatpush.bf16.msra.mxu2 %v1972_v55  ;;  %2002 = vmatpush.bf16.msra.mxu3 %v1974_v16 }
 0x6d4   :  { %2021 = vmatpush.bf16.msrb.mxu0 %v1972_v55  ;;  %2044 = vmatpush.bf16.msrb.mxu1 %v1974_v16 }
 0x6d6   :  { %2790 = vmatmul.msk.bf16.vlgmr.msra.gmra.mxu2 %vm352_vm0, %v3836_v42  ;;  %2792 = vmatmul.msk.bf16.vlgmr.msra.gmra.mxu3 %vm352_vm0, %v3838_v43 }
 0x6d7   :  { %2079 = vmatpush.bf16.msrb.mxu3 %v3829_v40  ;;  %2794 = vmatmul.msk.bf16.vlgmr.msrb.gmra.mxu0 %vm352_vm0, %v3838_v43  ;;  %v4153_v43 = vld [vmem:[#allocation44_spill] sm:$0xff] }
 0x6d8   :  { %2098 = vmatpush.bf16.msra.mxu0 %v3834_v41  ;;  %2796 = vmatmul.msk.bf16.vlgmr.msrb.gmra.mxu1 %vm352_vm0, %v3836_v42  ;;  %v4150_v42 = vld [vmem:[#allocation41_spill] sm:$0xff] }
 0x6d9   :  { %2060 = vmatpush.bf16.msrb.mxu2 %v3834_v41  ;;  %2121 = vmatpush.bf16.msra.mxu1 %v3829_v40  ;;  %v4151_v41 = vld [vmem:[#allocation42_spill] sm:$0xff]  ;;  %v4152_v40 = vld [vmem:[#allocation43_spill] sm:$0xff] }
 0x6db   :  { %2080 = vmatpush.bf16.msrb.mxu3 %v3842_v44 }
 0x6dc   :  { %2099 = vmatpush.bf16.msra.mxu0 %v3847_v45 }
 0x6dd   :  { %2061 = vmatpush.bf16.msrb.mxu2 %v3847_v45  ;;  %2122 = vmatpush.bf16.msra.mxu1 %v3842_v44  ;;  %v4154_v44 = vld [vmem:[#allocation45_spill] sm:$0xff]  ;;  %v4155_v45 = vld [vmem:[#allocation46_spill] sm:$0xff] }
 0x6df   :  { %2081 = vmatpush.bf16.msrb.mxu3 %v3861_v46 }
 0x6e0   :  { %2100 = vmatpush.bf16.msra.mxu0 %v4149_v58 }
 0x6e1   :  { %2062 = vmatpush.bf16.msrb.mxu2 %v4149_v58  ;;  %2123 = vmatpush.bf16.msra.mxu1 %v3861_v46  ;;  %v4156_v46 = vld [vmem:[#allocation47_spill] sm:$0xff]  ;;  %v2144_v58 = vld [vmem:[#allocation22 + $0x58] sm:$0xff] }
 0x6e3   :  { %2082 = vmatpush.bf16.msrb.mxu3 %v4150_v42 }
 0x6e4   :  { %2101 = vmatpush.bf16.msra.mxu0 %v4151_v41 }
 0x6e5   :  { %2063 = vmatpush.bf16.msrb.mxu2 %v4151_v41  ;;  %2124 = vmatpush.bf16.msra.mxu1 %v4150_v42  ;;  %v2149_v42 = vld [vmem:[#allocation23 + $0x58] sm:$0xff] }
 0x6e6   :  { %2791 = vmatmul.msk.bf16.gmra.mxu2 %vm352_vm0, %v4154_v44  ;;  %2793 = vmatmul.msk.bf16.gmra.mxu3 %vm352_vm0, %v4155_v45 }
 0x6e7   :  { %2083 = vmatpush.bf16.msrb.mxu3 %v4152_v40  ;;  %2795 = vmatmul.msk.bf16.gmra.mxu0 %vm352_vm0, %v4155_v45 }
 0x6e8   :  { %2102 = vmatpush.bf16.msra.mxu0 %v4153_v43  ;;  %2797 = vmatmul.msk.bf16.gmra.mxu1 %vm352_vm0, %v4154_v44  ;;  %v2147_v44 = vld [vmem:[#allocation23 + $0x48] sm:$0xff] }
 0x6e9   :  { %2064 = vmatpush.bf16.msrb.mxu2 %v4153_v43  ;;  %2125 = vmatpush.bf16.msra.mxu1 %v4152_v40  ;;  %v2142_v43 = vld [vmem:[#allocation22 + $0x48] sm:$0xff] }
 0x6eb   :  { %2084 = vmatpush.bf16.msrb.mxu3 %v4156_v46 }
 0x6ec   :  { %2103 = vmatpush.bf16.msra.mxu0 %v4157_v60 }
 0x6ed   :  { %2065 = vmatpush.bf16.msrb.mxu2 %v4157_v60  ;;  %2126 = vmatpush.bf16.msra.mxu1 %v4156_v46 }
 0x6ef   :  { %2085 = vmatpush.bf16.msrb.mxu3 %v4158_v61 }
 0x6f0   :  { %2104 = vmatpush.bf16.msra.mxu0 %v4159_v7 }
 0x6f1   :  { %2066 = vmatpush.bf16.msrb.mxu2 %v4159_v7  ;;  %2127 = vmatpush.bf16.msra.mxu1 %v4158_v61 }
 0x6f3   :  { %2086 = vmatpush.bf16.msrb.mxu3 %v4160_v2 }
 0x6f4   :  { %2105 = vmatpush.bf16.msra.mxu0 %v4161_v3 }
 0x6f5   :  { %2067 = vmatpush.bf16.msrb.mxu2 %v4161_v3  ;;  %2128 = vmatpush.bf16.msra.mxu1 %v4160_v2 }
 0x754   :  { %v2023_v59 = vpop.f32.mrf.mxu0 }
 0x755   :  { %v2046_v6 = vpop.f32.mrf.mxu1 }
 0x756   :  { %v2047_v4 = vadd.f32 %v2046_v6, %v2023_v59  ;;  %v2141_v59 = vld [vmem:[#allocation22 + $0x40] sm:$0xff] }
 0x757   :  { %v2146_v6 = vld [vmem:[#allocation23 + $0x40] sm:$0xff] }
 0x759   :  { %v1985_v8 = vpop.f32.mrf.mxu2  ;;  %v2004_v11 = vpop.f32.mrf.mxu3 }
 0x75a   :  { %v2033_v12 = vsub.f32 %v1985_v8, %v2004_v11 }
 0x75c   :  { %v2025_v39 = vpop.f32.mrf.mxu0 }
 0x75d   :  { %v2048_v1 = vpop.f32.mrf.mxu1 }
 0x75e   :  { %v2049_v5 = vadd.f32 %v2048_v1, %v2025_v39 }
 0x760   :  { %v2058_v10 = vpack.c.bf16 %v2049_v5, %v2047_v4 }
 0x761   :  { %v1987_v62 = vpop.f32.mrf.mxu2  ;;  %v2006_v0 = vpop.f32.mrf.mxu3 }
 0x762   :  { %2087 = vmatmul.bf16.vlgmr.msrb.gmra.mxu3 %v2058_v10  ;;  %2106 = vmatmul.bf16.vlgmr.msra.gmra.mxu0 %v2058_v10  ;;  %v2034_v56 = vsub.f32 %v1987_v62, %v2006_v0 }
 0x764   :  { %v2056_v63 = vpack.c.bf16 %v2034_v56, %v2033_v12  ;;  %v2028_v13 = vpop.f32.mrf.mxu0 }
 0x765   :  { %v2051_v15 = vpop.f32.mrf.mxu1 }
 0x766   :  { %2068 = vmatmul.bf16.vlgmr.msrb.gmra.mxu2 %v2056_v63  ;;  %2129 = vmatmul.bf16.vlgmr.msra.gmra.mxu1 %v2056_v63  ;;  %v2052_v17 = vadd.f32 %v2051_v15, %v2028_v13 }
 0x769   :  { %v1990_v9 = vpop.f32.mrf.mxu2  ;;  %v2009_v14 = vpop.f32.mrf.mxu3 }
 0x76a   :  { %v2035_v22 = vsub.f32 %v1990_v9, %v2009_v14 }
 0x76c   :  { %v2030_v51 = vpop.f32.mrf.mxu0 }
 0x76d   :  { %v2053_v57 = vpop.f32.mrf.mxu1 }
 0x76e   :  { %v2054_v18 = vadd.f32 %v2053_v57, %v2030_v51 }
 0x770   :  { %v2059_v19 = vpack.c.bf16 %v2054_v18, %v2052_v17 }
 0x771   :  { %v1992_v20 = vpop.f32.mrf.mxu2  ;;  %v2011_v21 = vpop.f32.mrf.mxu3 }
 0x772   :  { %2092 = vmatmul.bf16.gmra.mxu3 %v2059_v19  ;;  %2111 = vmatmul.bf16.gmra.mxu0 %v2059_v19  ;;  %v2036_v23 = vsub.f32 %v1992_v20, %v2011_v21  ;;  %v2942_v21 = vld [vmem:[#allocation20 + $0x38] sm:$0xff] }
 0x774   :  { %v2057_v24 = vpack.c.bf16 %v2036_v23, %v2035_v22  ;;  %v2943_v22 = vld [vmem:[#allocation19 + $0x38] sm:$0xff]  ;;  %v2944_v23 = vld [vmem:[#allocation16] sm:$0xff] }
 0x776   :  { %2073 = vmatmul.bf16.gmra.mxu2 %v2057_v24  ;;  %2134 = vmatmul.bf16.gmra.mxu1 %v2057_v24  ;;  %v2945_v24 = vld [vmem:[#allocation17] sm:$0xff] }
 0x7df   :  { %v2107_v25 = vpop.f32.mrf.mxu0 }
 0x7e3   :  { %v2130_v26 = vpop.f32.mrf.mxu1 }
 0x7e4   :  { %v2131_v40 = vadd.f32 %v2130_v26, %v2107_v25  ;;  %v2946_v25 = vld [vmem:[#allocation20 + $0x30] sm:$0xff] }
 0x7e5   :  { %v2088_v27 = vpop.f32.mrf.mxu3  ;;  %v2947_v26 = vld [vmem:[#allocation19 + $0x30] sm:$0xff] }
 0x7e6   :  { %v2154_v13 = vmul.f32 %v2146_v6, %v2131_v40  ;;  %v2166_v15 = vmul.f32 %v2141_v59, %v2131_v40 }
 0x7e7   :  { %v2109_v30 = vpop.f32.mrf.mxu0 }
 0x7e9   :  { %v2069_v29 = vpop.f32.mrf.mxu2 }
 0x7ea   :  { %v2117_v54 = vsub.f32 %v2069_v29, %v2088_v27  ;;  %v2948_v27 = vld [vmem:[#allocation20 + $0x28] sm:$0xff] }
 0x7eb   :  { %v2132_v31 = vpop.f32.mrf.mxu1  ;;  %v2949_v29 = vld [vmem:[#allocation19 + $0x28] sm:$0xff] }
 0x7ec   :  { %v2133_v55 = vadd.f32 %v2132_v31, %v2109_v30  ;;  %v2150_v4 = vmul.f32 %v2141_v59, %v2117_v54  ;;  %v2162_v5 = vmul.f32 %v2146_v6, %v2117_v54  ;;  %v2950_v30 = vld [vmem:[#allocation20 + $0x20] sm:$0xff] }
 0x7ed   :  { %v2090_v32 = vpop.f32.mrf.mxu3  ;;  %v2951_v31 = vld [vmem:[#allocation19 + $0x20] sm:$0xff] }
 0x7ee   :  { %v2155_v10 = vmul.f32 %v2147_v44, %v2133_v55  ;;  %v2167_v62 = vmul.f32 %v2142_v43, %v2133_v55  ;;  %v2158_v17 = vsub.f32 %v2150_v4, %v2154_v13  ;;  %v2170_v18 = vadd.f32 %v2166_v15, %v2162_v5 }
 0x7ef   :  { %v2112_v35 = vpop.f32.mrf.mxu0 }
 0x7f1   :  { %v2071_v33 = vpop.f32.mrf.mxu2 }
 0x7f2   :  { %v2118_v37 = vsub.f32 %v2071_v33, %v2090_v32  ;;  %v2952_v32 = vld [vmem:[#allocation20 + $0x18] sm:$0xff] }
 0x7f3   :  { %v2135_v34 = vpop.f32.mrf.mxu1  ;;  %v2953_v33 = vld [vmem:[#allocation19 + $0x18] sm:$0xff] }
 0x7f4   :  { %v2136_v47 = vadd.f32 %v2135_v34, %v2112_v35  ;;  %v2151_v61 = vmul.f32 %v2142_v43, %v2118_v37  ;;  %v2163_v7 = vmul.f32 %v2147_v44, %v2118_v37  ;;  %v2954_v34 = vld [vmem:[#allocation16 + $0x8] sm:$0xff]  ;;  %v2955_v35 = vld [vmem:[#allocation17 + $0x8] sm:$0xff]  ;;  %v2960_v37 = vld [vmem:[#allocation20] sm:$0xff] }
 0x7f5   :  { %v2093_v36 = vpop.f32.mrf.mxu3 }
 0x7f6   :  { %v2156_v2 = vmul.f32 %v2148_v28, %v2136_v47  ;;  %v2168_v3 = vmul.f32 %v2143_v52, %v2136_v47  ;;  %v2159_v9 = vsub.f32 %v2151_v61, %v2155_v10  ;;  %v2171_v14 = vadd.f32 %v2167_v62, %v2163_v7  ;;  %v2961_v47 = vld [vmem:[#allocation19] sm:$0xff] }
 0x7f7   :  { %v2114_v50 = vpop.f32.mrf.mxu0 }
 0x7f8   :  { %v2174_v19 = vpack.c.bf16 %v2159_v9, %v2158_v17  ;;  %v2176_v20 = vpack.c.bf16 %v2171_v14, %v2170_v18 }
 0x7f9   :  { %v2074_v38 = vpop.f32.mrf.mxu2 }
 0x7fa   :  { %v2119_v49 = vsub.f32 %v2074_v38, %v2093_v36  ;;  %v2956_v36 = vld [vmem:[#allocation20 + $0x10] sm:$0xff] }
 0x7fb   :  { %v2137_v48 = vpop.f32.mrf.mxu1  ;;  %v2957_v38 = vld [vmem:[#allocation19 + $0x10] sm:$0xff] }
 0x7fc   :  { %v2138_v53 = vadd.f32 %v2137_v48, %v2114_v50  ;;  %v2152_v45 = vmul.f32 %v2143_v52, %v2119_v49  ;;  %v2164_v46 = vmul.f32 %v2148_v28, %v2119_v49  ;;  %v2958_v48 = vld [vmem:[#allocation20 + $0x8] sm:$0xff] }
 0x7fd   :  { %v2095_v16 = vpop.f32.mrf.mxu3  ;;  %v2959_v49 = vld [vmem:[#allocation19 + $0x8] sm:$0xff] }
 0x7fe   :  { %v2157_v8 = vmul.f32 %v2149_v42, %v2138_v53  ;;  %v2169_v11 = vmul.f32 %v2144_v58, %v2138_v53  ;;  %v2160_v0 = vsub.f32 %v2152_v45, %v2156_v2  ;;  %v2172_v12 = vadd.f32 %v2168_v3, %v2164_v46 }
 0x801   :  { %v2076_v41 = vpop.f32.mrf.mxu2 }
 0x802   :  { %v2120_v60 = vsub.f32 %v2076_v41, %v2095_v16 }
 0x804   :  { %v2153_v39 = vmul.f32 %v2144_v58, %v2120_v60  ;;  %v2165_v1 = vmul.f32 %v2149_v42, %v2120_v60 }
 0x806   :  { %v2161_v56 = vsub.f32 %v2153_v39, %v2157_v8  ;;  %v2173_v63 = vadd.f32 %v2169_v11, %v2165_v1 }
 0x808   :  { %v2175_v51 = vpack.c.bf16 %v2161_v56, %v2160_v0  ;;  %v2177_v57 = vpack.c.bf16 %v2173_v63, %v2172_v12 }
 0x80a   :  { %2184 = vmatpush.bf16.msra.mxu2 %v2175_v51  ;;  %2203 = vmatpush.bf16.msra.mxu3 %v2177_v57 }
 0x80b   :  { %2222 = vmatpush.bf16.msrb.mxu0 %v2175_v51  ;;  %2245 = vmatpush.bf16.msrb.mxu1 %v2177_v57 }
 0x80e   :  { %2185 = vmatpush.bf16.msra.mxu2 %v2174_v19  ;;  %2204 = vmatpush.bf16.msra.mxu3 %v2176_v20 }
 0x80f   :  { %2223 = vmatpush.bf16.msrb.mxu0 %v2174_v19  ;;  %2246 = vmatpush.bf16.msrb.mxu1 %v2176_v20 }
 0x811   :  { %2798 = vmatmul.msk.bf16.vlgmr.msra.gmra.mxu2 %vm352_vm0, %v2944_v23  ;;  %2800 = vmatmul.msk.bf16.vlgmr.msra.gmra.mxu3 %vm352_vm0, %v2945_v24 }
 0x812   :  { %2281 = vmatpush.bf16.msrb.mxu3 %v2942_v21  ;;  %2802 = vmatmul.msk.bf16.vlgmr.msrb.gmra.mxu0 %vm352_vm0, %v2945_v24 }
 0x813   :  { %2300 = vmatpush.bf16.msra.mxu0 %v2943_v22  ;;  %2804 = vmatmul.msk.bf16.vlgmr.msrb.gmra.mxu1 %vm352_vm0, %v2944_v23 }
 0x814   :  { %2262 = vmatpush.bf16.msrb.mxu2 %v2943_v22  ;;  %2323 = vmatpush.bf16.msra.mxu1 %v2942_v21 }
 0x816   :  { %2282 = vmatpush.bf16.msrb.mxu3 %v2946_v25 }
 0x817   :  { %2301 = vmatpush.bf16.msra.mxu0 %v2947_v26 }
 0x818   :  { %2263 = vmatpush.bf16.msrb.mxu2 %v2947_v26  ;;  %2324 = vmatpush.bf16.msra.mxu1 %v2946_v25 }
 0x81a   :  { %2283 = vmatpush.bf16.msrb.mxu3 %v2948_v27 }
 0x81b   :  { %2302 = vmatpush.bf16.msra.mxu0 %v2949_v29 }
 0x81c   :  { %2264 = vmatpush.bf16.msrb.mxu2 %v2949_v29  ;;  %2325 = vmatpush.bf16.msra.mxu1 %v2948_v27 }
 0x81e   :  { %2284 = vmatpush.bf16.msrb.mxu3 %v2950_v30 }
 0x81f   :  { %2303 = vmatpush.bf16.msra.mxu0 %v2951_v31 }
 0x820   :  { %2265 = vmatpush.bf16.msrb.mxu2 %v2951_v31  ;;  %2326 = vmatpush.bf16.msra.mxu1 %v2950_v30 }
 0x821   :  { %2799 = vmatmul.msk.bf16.gmra.mxu2 %vm352_vm0, %v2954_v34  ;;  %2801 = vmatmul.msk.bf16.gmra.mxu3 %vm352_vm0, %v2955_v35 }
 0x822   :  { %2285 = vmatpush.bf16.msrb.mxu3 %v2952_v32  ;;  %2803 = vmatmul.msk.bf16.gmra.mxu0 %vm352_vm0, %v2955_v35 }
 0x823   :  { %2304 = vmatpush.bf16.msra.mxu0 %v2953_v33  ;;  %2805 = vmatmul.msk.bf16.gmra.mxu1 %vm352_vm0, %v2954_v34 }
 0x824   :  { %2266 = vmatpush.bf16.msrb.mxu2 %v2953_v33  ;;  %2327 = vmatpush.bf16.msra.mxu1 %v2952_v32 }
 0x826   :  { %2286 = vmatpush.bf16.msrb.mxu3 %v2956_v36 }
 0x827   :  { %2305 = vmatpush.bf16.msra.mxu0 %v2957_v38 }
 0x828   :  { %2267 = vmatpush.bf16.msrb.mxu2 %v2957_v38  ;;  %2328 = vmatpush.bf16.msra.mxu1 %v2956_v36 }
 0x82a   :  { %2287 = vmatpush.bf16.msrb.mxu3 %v2958_v48 }
 0x82b   :  { %2306 = vmatpush.bf16.msra.mxu0 %v2959_v49 }
 0x82c   :  { %2268 = vmatpush.bf16.msrb.mxu2 %v2959_v49  ;;  %2329 = vmatpush.bf16.msra.mxu1 %v2958_v48 }
 0x82e   :  { %2288 = vmatpush.bf16.msrb.mxu3 %v2960_v37 }
 0x82f   :  { %2307 = vmatpush.bf16.msra.mxu0 %v2961_v47 }
 0x830   :  { %2269 = vmatpush.bf16.msrb.mxu2 %v2961_v47  ;;  %2330 = vmatpush.bf16.msra.mxu1 %v2960_v37 }
 0x88f   :  { %v2225_v50 = vpop.f32.mrf.mxu0 }
 0x890   :  { %v2248_v52 = vpop.f32.mrf.mxu1 }
 0x891   :  { %v2249_v16 = vadd.f32 %v2248_v52, %v2225_v50 }
 0x894   :  { %v2187_v28 = vpop.f32.mrf.mxu2  ;;  %v2206_v53 = vpop.f32.mrf.mxu3 }
 0x895   :  { %v2235_v43 = vsub.f32 %v2187_v28, %v2206_v53 }
 0x897   :  { %v2227_v54 = vpop.f32.mrf.mxu0 }
 0x898   :  { %v2250_v55 = vpop.f32.mrf.mxu1 }
 0x899   :  { %v2251_v58 = vadd.f32 %v2250_v55, %v2227_v54  ;;  %v2900_v55 = vld [vmem:[#allocation28 + $0x38] sm:$0xff] }
 0x89a   :  { %2486 = vmatpush.bf16.msra.mxu3 %v2900_v55 }
 0x89b   :  { %v2260_v42 = vpack.c.bf16 %v2251_v58, %v2249_v16 }
 0x89c   :  { %v2189_v41 = vpop.f32.mrf.mxu2  ;;  %v2208_v40 = vpop.f32.mrf.mxu3 }
 0x89d   :  { %2289 = vmatmul.bf16.vlgmr.msrb.gmra.mxu3 %v2260_v42  ;;  %2308 = vmatmul.bf16.vlgmr.msra.gmra.mxu0 %v2260_v42  ;;  %v2236_v44 = vsub.f32 %v2189_v41, %v2208_v40  ;;  %v2899_v42 = vld [vmem:[#allocation28 + $0x30] sm:$0xff] }
 0x89e   :  { %2487 = vmatpush.bf16.msra.mxu3 %v2899_v42 }
 0x89f   :  { %v2258_v45 = vpack.c.bf16 %v2236_v44, %v2235_v43  ;;  %v2230_v46 = vpop.f32.mrf.mxu0 }
 0x8a0   :  { %v2253_v60 = vpop.f32.mrf.mxu1 }
 0x8a1   :  { %2270 = vmatmul.bf16.vlgmr.msrb.gmra.mxu2 %v2258_v45  ;;  %2331 = vmatmul.bf16.vlgmr.msra.gmra.mxu1 %v2258_v45  ;;  %v2254_v59 = vadd.f32 %v2253_v60, %v2230_v46  ;;  %v2898_v45 = vld [vmem:[#allocation28 + $0x28] sm:$0xff] }
 0x8a2   :  { %2488 = vmatpush.bf16.msra.mxu3 %v2898_v45 }
 0x8a4   :  { %v2192_v61 = vpop.f32.mrf.mxu2  ;;  %v2211_v7 = vpop.f32.mrf.mxu3 }
 0x8a5   :  { %v2237_v1 = vsub.f32 %v2192_v61, %v2211_v7 }
 0x8a7   :  { %v2232_v2 = vpop.f32.mrf.mxu0 }
 0x8a8   :  { %v2255_v3 = vpop.f32.mrf.mxu1 }
 0x8a9   :  { %v2256_v6 = vadd.f32 %v2255_v3, %v2232_v2  ;;  %v2897_v3 = vld [vmem:[#allocation28 + $0x20] sm:$0xff] }
 0x8aa   :  { %2489 = vmatpush.bf16.msra.mxu3 %v2897_v3 }
 0x8ab   :  { %v2261_v8 = vpack.c.bf16 %v2256_v6, %v2254_v59 }
 0x8ac   :  { %v2194_v11 = vpop.f32.mrf.mxu2  ;;  %v2213_v39 = vpop.f32.mrf.mxu3 }
 0x8ad   :  { %2294 = vmatmul.bf16.gmra.mxu3 %v2261_v8  ;;  %2313 = vmatmul.bf16.gmra.mxu0 %v2261_v8  ;;  %v2238_v4 = vsub.f32 %v2194_v11, %v2213_v39 }
 0x8af   :  { %v2259_v5 = vpack.c.bf16 %v2238_v4, %v2237_v1  ;;  %v2896_v1 = vld [vmem:[#allocation28 + $0x18] sm:$0xff] }
 0x8b0   :  { %2490 = vmatpush.bf16.msra.mxu3 %v2896_v1 }
 0x8b1   :  { %2275 = vmatmul.bf16.gmra.mxu2 %v2259_v5  ;;  %2336 = vmatmul.bf16.gmra.mxu1 %v2259_v5 }
 0x91a   :  { %v2309_v10 = vpop.f32.mrf.mxu0 }
 0x91e   :  { %v2332_v62 = vpop.f32.mrf.mxu1 }
 0x91f   :  { %v2333_v51 = vadd.f32 %v2332_v62, %v2309_v10 }
 0x920   :  { %v2290_v0 = vpop.f32.mrf.mxu3 }
 0x921   :  { %v2346_v22 = vmul.f32 %v2333_v51, %v2333_v51 }
 0x922   :  { %v2311_v56 = vpop.f32.mrf.mxu0 }
 0x924   :  { %v2271_v12 = vpop.f32.mrf.mxu2 }
 0x925   :  { %v2319_v15 = vsub.f32 %v2271_v12, %v2290_v0  ;;  %v2895_v12 = vld [vmem:[#allocation28 + $0x10] sm:$0xff] }
 0x926   :  { %v2334_v63 = vpop.f32.mrf.mxu1  ;;  %2491 = vmatpush.bf16.msra.mxu3 %v2895_v12 }
 0x927   :  { %v2335_v9 = vadd.f32 %v2334_v63, %v2311_v56  ;;  %v2342_v18 = vmul.f32 %v2319_v15, %v2319_v15 }
 0x928   :  { %v2292_v13 = vpop.f32.mrf.mxu3 }
 0x929   :  { %v2347_v19 = vmul.f32 %v2335_v9, %v2335_v9  ;;  %v4047_v25 = vadd.f32 %v2346_v22, %v2342_v18 }
 0x92a   :  { %v2314_v21 = vpop.f32.mrf.mxu0 }
 0x92b   :  { %vm2361_vm15 = vcmp.eq.f32.partialorder %v4047_v25, inf  ;;  %v2364_v22 = vand.u32 2147483648, %v4047_v25  ;;  %vm2363_vm2 = vcmp.eq.f32.partialorder %v4047_v25, 0.0 }
 0x92c   :  { %v2273_v14 = vpop.f32.mrf.mxu2 }
 0x92d   :  { %v2320_v57 = vsub.f32 %v2273_v14, %v2292_v13 }
 0x92e   :  { %v2337_v17 = vpop.f32.mrf.mxu1 }
 0x92f   :  { %v2343_v20 = vmul.f32 %v2320_v57, %v2320_v57  ;;  %v2338_v26 = vadd.f32 %v2337_v17, %v2314_v21 }
 0x930   :  { %v2295_v24 = vpop.f32.mrf.mxu3 }
 0x931   :  { %v4045_v23 = vadd.f32 %v2347_v19, %v2343_v20  ;;  %v2348_v30 = vmul.f32 %v2338_v26, %v2338_v26  ;;  %v2894_v19 = vld [vmem:[#allocation28 + $0x8] sm:$0xff] }
 0x932   :  { %v2316_v34 = vpop.f32.mrf.mxu0  ;;  %2492 = vmatpush.bf16.msra.mxu3 %v2894_v19 }
 0x933   :  { %2934 = vrsqrt.f32 %v4045_v23  ;;  %vm2373_vm12 = vcmp.eq.f32.partialorder %v4045_v23, inf  ;;  %v2376_v18 = vand.u32 2147483648, %v4045_v23  ;;  %vm2375_vm1 = vcmp.eq.f32.partialorder %v4045_v23, 0.0 }
 0x934   :  { %v2276_v27 = vpop.f32.mrf.mxu2  ;;  %2936 = vrsqrt.f32 %v4047_v25 }
 0x935   :  { %v2321_v29 = vsub.f32 %v2276_v27, %v2295_v24 }
 0x936   :  { %v2339_v32 = vpop.f32.mrf.mxu1 }
 0x937   :  { %v2344_v31 = vmul.f32 %v2321_v29, %v2321_v29  ;;  %v2340_v36 = vadd.f32 %v2339_v32, %v2316_v34  ;;  %v2402_v29 = vld [vmem:[%s4090_s20] sm:$0xf] }
 0x938   :  { %v2297_v38 = vpop.f32.mrf.mxu3 }
 0x939   :  { %v2352_v33 = vadd.f32 %v2348_v30, %v2344_v31  ;;  %v2935_v35 = vpop.eup %2934  ;;  %v2349_v50 = vmul.f32 %v2340_v36, %v2340_v36  ;;  %v2893_v30 = vld [vmem:[#allocation28] sm:$0xff] }
 0x93a   :  { %v2937_v49 = vpop.eup %2936  ;;  %v2367_v47 = vmul.f32 %v2935_v35, %v4045_v23  ;;  %2493 = vmatpush.bf16.msra.mxu3 %v2893_v30 }
 0x93b   :  { %2938 = vrsqrt.f32 %v2352_v33  ;;  %v2355_v28 = vmul.f32 %v2937_v49, %v4047_v25  ;;  %vm2385_vm10 = vcmp.eq.f32.partialorder %v2352_v33, inf  ;;  %v2388_v15 = vand.u32 2147483648, %v2352_v33 }
 0x93c   :  { %v2278_v48 = vpop.f32.mrf.mxu2  ;;  %v2368_v58 = vmul.f32 %v2935_v35, %v2367_v47  ;;  %vm2387_vm13 = vcmp.eq.f32.partialorder %v2352_v33, 0.0 }
 0x93d   :  { %v2322_v37 = vsub.f32 %v2278_v48, %v2297_v38  ;;  %v2356_v40 = vmul.f32 %v2937_v49, %v2355_v28 }
 0x93e   :  { %v2369_v44 = vmul.f32 0.5, %v2368_v58 }
 0x93f   :  { %v2345_v52 = vmul.f32 %v2322_v37, %v2322_v37  ;;  %v2357_v60 = vmul.f32 0.5, %v2356_v40 }
 0x940   :  { %v2370_v2 = vsub.f32 1.5, %v2369_v44 }
 0x941   :  { %v2939_v53 = vpop.eup %2938  ;;  %v2353_v54 = vadd.f32 %v2349_v50, %v2345_v52  ;;  %v2358_v8 = vsub.f32 1.5, %v2357_v60 }
 0x942   :  { %v2379_v16 = vmul.f32 %v2939_v53, %v2352_v33  ;;  %v2371_v39 = vmul.f32 %v2935_v35, %v2370_v2 }
 0x943   :  { %2940 = vrsqrt.f32 %v2353_v54  ;;  %v2359_v10 = vmul.f32 %v2937_v49, %v2358_v8  ;;  %vm2397_vm11 = vcmp.eq.f32.partialorder %v2353_v54, inf  ;;  %v2400_v9 = vand.u32 2147483648, %v2353_v54 }
 0x944   :  { %v2380_v41 = vmul.f32 %v2939_v53, %v2379_v16  ;;  %v2372_v0 = vmul.f32 %v2371_v39, %v4045_v23  ;;  %vm2399_vm14 = vcmp.eq.f32.partialorder %v2353_v54, 0.0 }
 0x945   :  { %v2360_v13 = vmul.f32 %v2359_v10, %v4047_v25 }
 0x946   :  { %v2381_v43 = vmul.f32 0.5, %v2380_v41  ;;  %v2374_v51 = vsel %vm2373_vm12, %v4045_v23, %v2372_v0 }
 0x947   :  { %v2362_v21 = vsel %vm2361_vm15, %v4047_v25, %v2360_v13  ;;  %v2377_v24 = vsel %vm2375_vm1, %v2376_v18, %v2374_v51 }
 0x948   :  { %v2382_v46 = vsub.f32 1.5, %v2381_v43  ;;  %v2365_v26 = vsel %vm2363_vm2, %v2364_v22, %v2362_v21 }
 0x949   :  { %v2941_v61 = vpop.eup %2940  ;;  %v2403_v27 = vpack.c.bf16 %v2377_v24, %v2365_v26 }
 0x94a   :  { %v2391_v7 = vmul.f32 %v2941_v61, %v2353_v54  ;;  %v2383_v59 = vmul.f32 %v2939_v53, %v2382_v46 }
 0x94c   :  { %v2392_v6 = vmul.f32 %v2941_v61, %v2391_v7  ;;  %v2384_v4 = vmul.f32 %v2383_v59, %v2352_v33 }
 0x94e   :  { %v2393_v11 = vmul.f32 0.5, %v2392_v6  ;;  %v2386_v56 = vsel %vm2385_vm10, %v2352_v33, %v2384_v4 }
 0x94f   :  { %v2389_v57 = vsel %vm2387_vm13, %v2388_v15, %v2386_v56 }
 0x950   :  { %v2394_v5 = vsub.f32 1.5, %v2393_v11 }
 0x952   :  { %v2395_v62 = vmul.f32 %v2941_v61, %v2394_v5 }
 0x954   :  { %v2396_v63 = vmul.f32 %v2395_v62, %v2353_v54 }
 0x956   :  { %v2398_v14 = vsel %vm2397_vm11, %v2353_v54, %v2396_v63 }
 0x957   :  { %v2401_v17 = vsel %vm2399_vm14, %v2400_v9, %v2398_v14 }
 0x958   :  { %v2404_v20 = vpack.c.bf16 %v2401_v17, %v2389_v57 }
 0x95a   :  { %2414 = vmatpush.bf16.msra.mxu2 %v2404_v20 }
 0x95e   :  { %2415 = vmatpush.bf16.msra.mxu2 %v2403_v27 }
 0x961   :  { %2806 = vmatmul.msk.bf16.vlgmr.msra.gmra.mxu2 %vm352_vm0, %v2402_v29 }
 0x9e4   :  { %v2417_v31 = vpop.f32.mrf.mxu2 }
 0x9e5   :  { %v2421_v23 = vpack.c.bf16 %v2417_v31, %v2417_v31 }
 0x9e7   :  { %2494 = vmatmul.bf16.vlgmr.msra.gmra.mxu3 %v2421_v23 }
 0x9ec   :  { %v2419_v32 = vpop.f32.mrf.mxu2 }
 0xa6a   :  { %v2495_v25 = vpop.f32.mrf.mxu3 }
 0xa6b   :  { %v2499_v33 = vmul.f32 %v2495_v25, %v2495_v25 }
 0xa6d   :  { %2500 = vst [vmem:[#allocation29] sm:$0xff] %v2499_v33 }
 0xa6e   :  { %2511 = dma.vmem_to_hbm [thread:$0]  %s2507_s15, 128, %s2509_s12, [#allocation4]  }
 0xa72   :  { %v2497_v34 = vpop.f32.mrf.mxu3 }
 0xa73   :  { %3412 = dma.done.wait [#allocation4], 128  }
 0xa74   :  { %3413 = vsyncadd [#allocation4], 4294967168 }
 0xa75   :  { %2516 = vsyncpa [#allocation3], 1 }
 0xa76   :  { %2517 = vsyncpa [#allocation6], 1 }
 0xa77   :  { %2518 = vsyncpa [#allocation9], 1 }
 0xa78   :  { %2519 = vsyncpa [#allocation12], 1 }
 0xa79   :  { %2520 = vsyncpa [#allocation15], 1 }
 0xa7a   :  { %2521 = vsyncpa [#allocation18], 1 }
 0xa7b   :  { %2522 = vsyncpa [#allocation21], 1 }
 0xa7c   :  { %2523 = vsyncpa [#allocation24], 1 }
 0xa7d   :  { %2524 = vsyncpa [#allocation27], 1 }
 0xa7e   :  { %2525 = vsyncpa [#allocation4], 1 }

</bundles_post_ra>
